<compile_context>
chip_gen: v6e
topology: v6e:2x2x1
jax: 0.10.0
libtpu: 0.0.40
codegen_flags: <defaults>
</compile_context>

<pallas_src>
import jax
import jax.numpy as jnp
from jax.experimental import pallas as pl
from jax.experimental.pallas import tpu as pltpu

KH = KW = 3  # 3x3 conv


def conv_bn_relu_kernel(x_ref, w_ref, b_ref, o_ref):
    # x_ref: (1, H+2, W+2, Cin)  spatially padded NHWC input tile (f32)
    # w_ref: (Cout, KH*KW*Cin)   BN-scale-folded weights, bf16 (MXU operand)
    # b_ref: (Cout, 1)           folded BN bias (f32)
    # o_ref: (1, Cout, H*W)      lane-dense output (Cout on sublanes, H*W on lanes)
    _, Hp, Wp, Cin = x_ref.shape
    H = Hp - (KH - 1)
    W = Wp - (KW - 1)

    # im2col: gather the 9 shifted windows into one (H*W, 9*Cin) operand.
    taps = []
    for kh in range(KH):
        for kw in range(KW):
            taps.append(x_ref[0, kh:kh + H, kw:kw + W, :].reshape(H * W, Cin))
    patches = jnp.concatenate(taps, axis=-1).astype(w_ref.dtype)   # (H*W, 9*Cin)

    # ONE MXU matmul, K = 9*Cin, f32 accumulation:
    #   (Cout, K) . (M, K)^T -> (Cout, M)    (standard "A @ B.T" pattern)
    acc = jax.lax.dot_general(
        w_ref[...], patches,
        dimension_numbers=(((1,), (1,)), ((), ())),
        preferred_element_type=jnp.float32)                        # (Cout, H*W)

    # Folded BN bias + ReLU (f32 pointwise), dense unmasked store.
    y = jnp.maximum(acc + b_ref[...], 0.0)
    o_ref[0, ...] = y.astype(o_ref.dtype)


def mixed_op_forward(x_nchw, w_oihw, gamma, beta, running_mean, running_var,
                     eps=1e-5):
    """Conv3x3(s=1,p=1) + BN(inference) + ReLU.  NCHW in / NCHW out."""
    N, Cin, H, W = x_nchw.shape
    Cout = w_oihw.shape[0]

    # ---- wrapper glue (layout plumbing only) --------------------------------
    # NCHW -> NHWC + spatial pad(1).  XLA fuses these into a single small pass.
    xp = jnp.pad(jnp.transpose(x_nchw, (0, 2, 3, 1)),
                 ((0, 0), (1, 1), (1, 1), (0, 0)))            # (N, H+2, W+2, Cin)

    # Fold BN scale into the conv weights; kernel only adds bias.
    scale = gamma / jnp.sqrt(running_var + eps)                # (Cout,)
    bias = (beta - running_mean * scale).reshape(Cout, 1).astype(jnp.float32)
    w_folded = w_oihw * scale[:, None, None, None]             # (Cout,Cin,KH,KW)
    # (Cout,Cin,KH,KW) -> (Cout, KH*KW*Cin); column order (kh, kw, ci) matches
    # the in-kernel im2col ordering.  bf16 = MXU-native on v5e/v6e/v7x.
    w_mat = jnp.transpose(w_folded, (0, 2, 3, 1)).reshape(
        Cout, KH * KW * Cin).astype(jnp.bfloat16)

    out = pl.pallas_call(
        conv_bn_relu_kernel,
        out_shape=jax.ShapeDtypeStruct((N, Cout, H * W), x_nchw.dtype),
        grid=(N,),
        in_specs=[
            pl.BlockSpec((1, H + 2, W + 2, Cin), lambda n: (n, 0, 0, 0)),
            pl.BlockSpec((Cout, KH * KW * Cin), lambda n: (0, 0)),
            pl.BlockSpec((Cout, 1), lambda n: (0, 0)),
        ],
        out_specs=pl.BlockSpec((1, Cout, H * W), lambda n: (n, 0, 0)),
        compiler_params=pltpu.CompilerParams(
            dimension_semantics=("parallel",)),
    )(xp, w_mat, bias)

    # Output is already in NCHW channel order: (N, Cout, H*W) -> (N, Cout, H, W)
    # is a free reshape (no transpose, no extra HBM pass).
    return out.reshape(N, Cout, H, W)


def _reference(x_nchw, w_oihw, gamma, beta, running_mean, running_var,
               eps=1e-5):
    y = jax.lax.conv_general_dilated(
        x_nchw.astype(jnp.float32), w_oihw.astype(jnp.float32),
        window_strides=(1, 1), padding=((1, 1), (1, 1)),
        dimension_numbers=("NCHW", "OIHW", "NCHW"))
    scale = (gamma / jnp.sqrt(running_var + eps)).reshape(1, -1, 1, 1)
    bias = (beta - running_mean * gamma / jnp.sqrt(running_var + eps)
            ).reshape(1, -1, 1, 1)
    return jnp.maximum(y * scale + bias, 0.0)


if __name__ == "__main__":
    # Small shapes consistent with the module: MixedOp(C_in=4, C_out=8, ...)
    N, C_in, C_out, H, W = 2, 4, 8, 16, 16

    key = jax.random.PRNGKey(0)
    kx, kw, kg, kb = jax.random.split(key, 4)

    x = jax.random.normal(kx, (N, C_in, H, W), dtype=jnp.float32)
    # Deterministic parameter init (synthetic; no checkpoint loading).
    w = jax.random.normal(kw, (C_out, C_in, KH, KW), dtype=jnp.float32) * 0.1
    gamma = 1.0 + 0.01 * jax.random.normal(kg, (C_out,), dtype=jnp.float32)
    beta = 0.01 * jax.random.normal(kb, (C_out,), dtype=jnp.float32)
    running_mean = jnp.zeros((C_out,), jnp.float32)
    running_var = jnp.ones((C_out,), jnp.float32)

    out = mixed_op_forward(x, w, gamma, beta, running_mean, running_var)
    out = jax.block_until_ready(out)

    ref = _reference(x, w, gamma, beta, running_mean, running_var)
    assert out.shape == (N, C_out, H, W)
    # bf16 MXU operands with f32 accumulation -> loosened tolerance.
    assert jnp.max(jnp.abs(out - ref)) < 5e-2, "mismatch vs. JAX reference"

    print("KERNEL_OK")
</pallas_src>

<mosaic_0001>
module attributes {stable_mosaic.version = 11 : i64} {
  func.func @conv_bn_relu_kernel(%arg0: i32, %arg1: memref<1x18x18x4xf32, #tpu.memory_space<vmem>>, %arg2: memref<8x36xbf16, #tpu.memory_space<vmem>>, %arg3: memref<8x1xf32, #tpu.memory_space<vmem>>, %arg4: memref<1x8x256xf32, #tpu.memory_space<vmem>>) attributes {dimension_semantics = [#tpu.dimension_semantics<parallel>], iteration_bounds = array<i64: 2>, scalar_prefetch = 0 : i64, scratch_operands = 0 : i64, tpu.core_type = #tpu.core_type<tc>, window_params = [{transform_indices = @transform_0, window_bounds = array<i64: 1, 18, 18, 4>}, {pipeline_mode = #tpu.pipeline_mode<synchronous>, transform_indices = @transform_1, window_bounds = array<i64: 8, 36>}, {pipeline_mode = #tpu.pipeline_mode<synchronous>, transform_indices = @transform_2, window_bounds = array<i64: 8, 1>}, {transform_indices = @transform_3, window_bounds = array<i64: 1, 8, 256>}]} {
    %c0 = arith.constant 0 : index
    %c0_0 = arith.constant 0 : index
    %c0_1 = arith.constant 0 : index
    %c0_2 = arith.constant 0 : index
    %0 = vector.load %arg1[%c0, %c0_0, %c0_1, %c0_2] : memref<1x18x18x4xf32, #tpu.memory_space<vmem>>, vector<1x16x16x4xf32>
    %1 = vector.shape_cast %0 : vector<1x16x16x4xf32> to vector<16x16x4xf32>
    %2 = vector.shape_cast %1 : vector<16x16x4xf32> to vector<256x4xf32>
    %c0_3 = arith.constant 0 : index
    %c0_4 = arith.constant 0 : index
    %c1 = arith.constant 1 : index
    %c0_5 = arith.constant 0 : index
    %3 = vector.load %arg1[%c0_3, %c0_4, %c1, %c0_5] : memref<1x18x18x4xf32, #tpu.memory_space<vmem>>, vector<1x16x16x4xf32>
    %4 = vector.shape_cast %3 : vector<1x16x16x4xf32> to vector<16x16x4xf32>
    %5 = vector.shape_cast %4 : vector<16x16x4xf32> to vector<256x4xf32>
    %c0_6 = arith.constant 0 : index
    %c0_7 = arith.constant 0 : index
    %c2 = arith.constant 2 : index
    %c0_8 = arith.constant 0 : index
    %6 = vector.load %arg1[%c0_6, %c0_7, %c2, %c0_8] : memref<1x18x18x4xf32, #tpu.memory_space<vmem>>, vector<1x16x16x4xf32>
    %7 = vector.shape_cast %6 : vector<1x16x16x4xf32> to vector<16x16x4xf32>
    %8 = vector.shape_cast %7 : vector<16x16x4xf32> to vector<256x4xf32>
    %c0_9 = arith.constant 0 : index
    %c1_10 = arith.constant 1 : index
    %c0_11 = arith.constant 0 : index
    %c0_12 = arith.constant 0 : index
    %9 = vector.load %arg1[%c0_9, %c1_10, %c0_11, %c0_12] : memref<1x18x18x4xf32, #tpu.memory_space<vmem>>, vector<1x16x16x4xf32>
    %10 = vector.shape_cast %9 : vector<1x16x16x4xf32> to vector<16x16x4xf32>
    %11 = vector.shape_cast %10 : vector<16x16x4xf32> to vector<256x4xf32>
    %c0_13 = arith.constant 0 : index
    %c1_14 = arith.constant 1 : index
    %c1_15 = arith.constant 1 : index
    %c0_16 = arith.constant 0 : index
    %12 = vector.load %arg1[%c0_13, %c1_14, %c1_15, %c0_16] : memref<1x18x18x4xf32, #tpu.memory_space<vmem>>, vector<1x16x16x4xf32>
    %13 = vector.shape_cast %12 : vector<1x16x16x4xf32> to vector<16x16x4xf32>
    %14 = vector.shape_cast %13 : vector<16x16x4xf32> to vector<256x4xf32>
    %c0_17 = arith.constant 0 : index
    %c1_18 = arith.constant 1 : index
    %c2_19 = arith.constant 2 : index
    %c0_20 = arith.constant 0 : index
    %15 = vector.load %arg1[%c0_17, %c1_18, %c2_19, %c0_20] : memref<1x18x18x4xf32, #tpu.memory_space<vmem>>, vector<1x16x16x4xf32>
    %16 = vector.shape_cast %15 : vector<1x16x16x4xf32> to vector<16x16x4xf32>
    %17 = vector.shape_cast %16 : vector<16x16x4xf32> to vector<256x4xf32>
    %c0_21 = arith.constant 0 : index
    %c2_22 = arith.constant 2 : index
    %c0_23 = arith.constant 0 : index
    %c0_24 = arith.constant 0 : index
    %18 = vector.load %arg1[%c0_21, %c2_22, %c0_23, %c0_24] : memref<1x18x18x4xf32, #tpu.memory_space<vmem>>, vector<1x16x16x4xf32>
    %19 = vector.shape_cast %18 : vector<1x16x16x4xf32> to vector<16x16x4xf32>
    %20 = vector.shape_cast %19 : vector<16x16x4xf32> to vector<256x4xf32>
    %c0_25 = arith.constant 0 : index
    %c2_26 = arith.constant 2 : index
    %c1_27 = arith.constant 1 : index
    %c0_28 = arith.constant 0 : index
    %21 = vector.load %arg1[%c0_25, %c2_26, %c1_27, %c0_28] : memref<1x18x18x4xf32, #tpu.memory_space<vmem>>, vector<1x16x16x4xf32>
    %22 = vector.shape_cast %21 : vector<1x16x16x4xf32> to vector<16x16x4xf32>
    %23 = vector.shape_cast %22 : vector<16x16x4xf32> to vector<256x4xf32>
    %c0_29 = arith.constant 0 : index
    %c2_30 = arith.constant 2 : index
    %c2_31 = arith.constant 2 : index
    %c0_32 = arith.constant 0 : index
    %24 = vector.load %arg1[%c0_29, %c2_30, %c2_31, %c0_32] : memref<1x18x18x4xf32, #tpu.memory_space<vmem>>, vector<1x16x16x4xf32>
    %25 = vector.shape_cast %24 : vector<1x16x16x4xf32> to vector<16x16x4xf32>
    %26 = vector.shape_cast %25 : vector<16x16x4xf32> to vector<256x4xf32>
    %27 = tpu.concatenate %2, %5, %8, %11, %14, %17, %20, %23, %26 in 1 : vector<256x4xf32>, vector<256x4xf32>, vector<256x4xf32>, vector<256x4xf32>, vector<256x4xf32>, vector<256x4xf32>, vector<256x4xf32>, vector<256x4xf32>, vector<256x4xf32> -> vector<256x36xf32>
    %28 = arith.truncf %27 : vector<256x36xf32> to vector<256x36xbf16>
    %c0_33 = arith.constant 0 : index
    %c0_34 = arith.constant 0 : index
    %29 = vector.load %arg2[%c0_33, %c0_34] : memref<8x36xbf16, #tpu.memory_space<vmem>>, vector<8x36xbf16>
    %cst = arith.constant dense<0.000000e+00> : vector<8x256xf32>
    %30 = tpu.matmul %29, %28, %cst {dimension_numbers = #tpu.dot_dimension_numbers<[1], [1], [0], [0], [0, 0, 1, 0], [], []>} : vector<8x36xbf16>, vector<256x36xbf16>, vector<8x256xf32> -> vector<8x256xf32>
    %c0_35 = arith.constant 0 : index
    %c0_36 = arith.constant 0 : index
    %31 = vector.load %arg3[%c0_35, %c0_36] : memref<8x1xf32, #tpu.memory_space<vmem>>, vector<8x1xf32>
    %32 = vector.broadcast %31 : vector<8x1xf32> to vector<8x256xf32>
    %33 = arith.addf %30, %32 : vector<8x256xf32>
    %cst_37 = arith.constant 0.000000e+00 : f32
    %34 = vector.broadcast %cst_37 : f32 to vector<8x256xf32>
    %35 = arith.maximumf %33, %34 : vector<8x256xf32>
    %c0_38 = arith.constant 0 : index
    %c0_39 = arith.constant 0 : index
    %c0_40 = arith.constant 0 : index
    %36 = vector.load %arg4[%c0_38, %c0_39, %c0_40] : memref<1x8x256xf32, #tpu.memory_space<vmem>>, vector<1x8x256xf32>
    %37 = vector.shape_cast %36 : vector<1x8x256xf32> to vector<8x256xf32>
    %38 = vector.shape_cast %35 : vector<8x256xf32> to vector<1x8x256xf32>
    tpu.vector_store %arg4[%c0_38, %c0_39, %c0_40], %38 {strides = array<i32>} : memref<1x8x256xf32, #tpu.memory_space<vmem>>, vector<1x8x256xf32>,
    return
  }
  func.func @transform_0(%arg0: i32) -> (i32, i32, i32, i32) {
    %c0_i32 = arith.constant 0 : i32
    %c0_i32_0 = arith.constant 0 : i32
    %c0_i32_1 = arith.constant 0 : i32
    %c0_i32_2 = arith.constant 0 : i32
    return %arg0, %c0_i32, %c0_i32_0, %c0_i32_1 : i32, i32, i32, i32
  }
  func.func @transform_1(%arg0: i32) -> (i32, i32) {
    %c0_i32 = arith.constant 0 : i32
    %c0_i32_0 = arith.constant 0 : i32
    %c0_i32_1 = arith.constant 0 : i32
    return %c0_i32, %c0_i32_0 : i32, i32
  }
  func.func @transform_2(%arg0: i32) -> (i32, i32) {
    %c0_i32 = arith.constant 0 : i32
    %c0_i32_0 = arith.constant 0 : i32
    %c0_i32_1 = arith.constant 0 : i32
    return %c0_i32, %c0_i32_0 : i32, i32
  }
  func.func @transform_3(%arg0: i32) -> (i32, i32, i32) {
    %c0_i32 = arith.constant 0 : i32
    %c0_i32_0 = arith.constant 0 : i32
    %c0_i32_1 = arith.constant 0 : i32
    return %arg0, %c0_i32, %c0_i32_0 : i32, i32, i32
  }
}

</mosaic_0001>

<bundles_post_ra>
// kernel: tpu_custom_call.1
= control target key start
LH: loop header
LB: loop body
LE: loop exit
PB: predicated region body
PF: predicated region fallthrough
CT: control target
= control target key end

     0   :  { %8 = vsyncpa [#allocation3], 0  ;;  %s4120_s0 = inlined_call_operand.vmem [shape: f32[2,18,18,4], index: 0, kind: input, shape index: {}]   ;;  %s4121_s1 = inlined_call_operand.vmem [shape: bf16[8,36], index: 1, kind: input, shape index: {}]   ;;  %s4122_s2 = inlined_call_operand.vmem [shape: f32[8,1], index: 2, kind: input, shape index: {}]   ;;  %s4123_s3 = inlined_call_operand.hbm [shape: f32[2,8,256], index: 3, kind: output, shape index: {}]  }
   0x1   :  { %10 = vsyncpa [#allocation3 + $0x1], 0  ;;  %s2963_s12 = smov 0   ;;  %s2965_s13 = smov 0  }
   0x2   :  { %s2967_s14 = smov 0   ;;  %s2969_s15 = smov 0  }
   0x3 LB: > { %s2984_s16 = sadd.s32 4294967295, %s2931_s15   ;;  %s1942_s17 = sadd.s32 4294967294, %s2931_s15   ;;  %s2931_s15 = sphi %s2969_s15, %s4170_s15   ;;  %s2927_s14 = sphi %s2967_s14, %s4169_s14   ;;  %s2923_s13 = sphi %s2965_s13, %s4168_s13   ;;  %s2919_s12 = sphi %s2963_s12, %s4167_s12  }
   0x4   : > { %s2988_s18 = sadd.s32 1, %s2931_s15   ;;  %s91_s19 = sadd.s32 1, %s2927_s14 }
   0x5   : > { %s88_s20 = ssub.s32 %s2931_s15, %s2988_s18  ;;  %p101_p0 = scmp.ne.s32.totalorder %s2927_s14, %s2923_s13 }
   0x6   : > { %p89_p1 = scmp.eq.s32.totalorder %s88_s20, 0  ;;  %p102_p2 = scmp.eq.s32.totalorder %s2984_s16, 1 }
   0x7   : > { %p107_p3 = scmp.ne.s32.totalorder %s2923_s13, %s2919_s12  ;;  %p108_p4 = scmp.eq.s32.totalorder %s1942_s17, 1 }
   0x8   : > { %s2999_s21 = scalar_select %p89_p1, %s2927_s14, %s91_s19  }
   0x9   : > { %p3001_p5 = por %p102_p2, %p101_p0  ;;  %p3005_p6 = por %p108_p4, %p107_p3 }
   0xa   : > { %p1945_p7 = scmp.ge.s32.totalorder %s2931_s15, 1  ;;  %p140_p8 = scmp.lt.s32.totalorder %s2931_s15, 3 }
   0xc   : > { %p141_p9 = pnand %p1945_p7, %p140_p8 }
   0xe   : > { %144 = sbr.rel (%p141_p9) target bundleno = 622 (0x26e), region = 32 }
  0x13   : > { %p164_p10 = scmp.lt.s32.totalorder %s2984_s16, 1  ;;  %s2933_s29 = smov 4   ;;  %vm1484_vm0 = vcmask 31744   ;;  %vm1517_vm1 = vcmask 64512   ;;  %vm1550_vm2 = vcmask 97280   ;;  %vm1583_vm3 = vcmask 130048  }
  0x14   : > { %s2934_s30 = smov 8   ;;  %s2935_s4 = smov 12   ;;  %vm1616_vm4 = vcmask 162816   ;;  %vm1649_vm5 = vcmask 195584   ;;  %vm1682_vm6 = vcmask 228352   ;;  %vm1715_vm7 = vcmask 261120  }
  0x15   : > { %s165_s24 = scalar_select %p164_p10, %s2984_s16, 1  ;;  %vm1771_vm8 = vcmask 293888  }
  0x16   : > { %s2936_s5 = smov 16   ;;  %s2937_s6 = smov 20  }
  0x17   : > { %s2173_s25 = smul.u32 432, %s165_s24  ;;  %s2938_s7 = smov 24  }
  0x18   : > { %s2939_s8 = smov 28   ;;  %s2940_s9 = smov 32  }
  0x19   : > { %s3016_s28 = scalar_lea.vmem %s4120_s0, %s2173_s25  ;;  %s161_s20 = sand.u32 1, %s2923_s13  }
  0x1a   : > { %v206_v0 = vld [vmem:[%s3016_s28 + $0x31] sm:$0xff]  ;;  %v207_v1 = vld [vmem:[%s3016_s28 + $0x39] sm:$0xff]  ;;  %v202_v2 = vld [vmem:[%s3016_s28 + $0x1] sm:$0xff]  ;;  %s1946_s24 = sshll.u32 %s161_s20, 4  ;;  %s2146_s25 = sshll.u32 %s2984_s16, 8 }
  0x1b   : > { %v2232_v3 = vpack.i.bf16 %v207_v1, %v206_v0  ;;  %v203_v4 = vld [vmem:[%s3016_s28 + $0x9] sm:$0xff]  ;;  %v209_v6 = vld [vmem:[%s3016_s28 + $0x51] sm:$0xff]  ;;  %v204_v8 = vld [vmem:[%s3016_s28 + $0x19] sm:$0xff]  ;;  %s163_s26 = scalar_lea.vmem [#allocation2], %s1946_s24  ;;  %s2942_s16 = smov [#allocation2]  }
  0x1c   : > { %v208_v5 = vld [vmem:[%s3016_s28 + $0x49] sm:$0xff]  ;;  %v2222_v7 = vpack.i.bf16 %v203_v4, %v202_v2  ;;  %v205_v9 = vld [vmem:[%s3016_s28 + $0x21] sm:$0xff]  ;;  %v212_v12 = vld [vmem:[%s3016_s28 + $0x79] sm:$0xff]  ;;  %s1883_s27 = sshll.u32 %s163_s26, 4  ;;  %s1884_s27 = int_to_ptr.vmem [resolvable:$true] %s1883_s27 }
  0x1d   : > { %2233 = vrot.lane.b32.xlu1 %v2232_v3, %s2933_s29  ;;  %v2237_v10 = vpack.i.bf16 %v209_v6, %v208_v5  ;;  %v2227_v11 = vpack.i.bf16 %v205_v9, %v204_v8  ;;  %v213_v13 = vld [vmem:[%s3016_s28 + $0x81] sm:$0xff]  ;;  %v211_v15 = vld [vmem:[%s3016_s28 + $0x69] sm:$0xff]  ;;  %v217_v19 = vld [vmem:[%s3016_s28 + $0xb1] sm:$0xff] }
  0x1e   : > { %2223 = vrot.lane.b32.xlu0 %v2222_v7, %s2933_s29  ;;  %v210_v14 = vld [vmem:[%s3016_s28 + $0x61] sm:$0xff]  ;;  %v3033_v16 = vpack.i.bf16 %v213_v13, %v212_v12  ;;  %v216_v18 = vld [vmem:[%s3016_s28 + $0xa9] sm:$0xff]  ;;  %v214_v20 = vld [vmem:[%s3016_s28 + $0x91] sm:$0xff] }
  0x1f   : > { %v2242_v17 = vpack.i.bf16 %v211_v15, %v210_v14  ;;  %v215_v21 = vld [vmem:[%s3016_s28 + $0x99] sm:$0xff]  ;;  %v3042_v22 = vpack.i.bf16 %v217_v19, %v216_v18  ;;  %v221_v25 = vld [vmem:[%s3016_s28 + $0xe1] sm:$0xff]  ;;  %v219_v27 = vld [vmem:[%s3016_s28 + $0xc9] sm:$0xff] }
  0x20   : > { %v3045_v23 = vpack.i.bf16 %v215_v21, %v214_v20  ;;  %v220_v24 = vld [vmem:[%s3016_s28 + $0xd9] sm:$0xff]  ;;  %v218_v26 = vld [vmem:[%s3016_s28 + $0xc1] sm:$0xff]  ;;  %v224_v30 = vld [vmem:[%s3016_s28 + $0x109] sm:$0xff] }
  0x21   : > { %2238 = vrot.lane.b32.xlu1 %v2237_v10, %s2933_s29  ;;  %v3053_v28 = vpack.i.bf16 %v221_v25, %v220_v24  ;;  %v3057_v29 = vpack.i.bf16 %v219_v27, %v218_v26  ;;  %v225_v31 = vld [vmem:[%s3016_s28 + $0x111] sm:$0xff]  ;;  %v223_v33 = vld [vmem:[%s3016_s28 + $0xf9] sm:$0xff]  ;;  %v229_v37 = vld [vmem:[%s3016_s28 + $0x141] sm:$0xff] }
  0x22   : > { %2228 = vrot.lane.b32.xlu0 %v2227_v11, %s2933_s29  ;;  %v222_v32 = vld [vmem:[%s3016_s28 + $0xf1] sm:$0xff]  ;;  %v2277_v34 = vpack.i.bf16 %v225_v31, %v224_v30  ;;  %v228_v36 = vld [vmem:[%s3016_s28 + $0x139] sm:$0xff]  ;;  %v226_v38 = vld [vmem:[%s3016_s28 + $0x121] sm:$0xff] }
  0x23   : > { %v2272_v35 = vpack.i.bf16 %v223_v33, %v222_v32  ;;  %v227_v39 = vld [vmem:[%s3016_s28 + $0x129] sm:$0xff]  ;;  %v3072_v40 = vpack.i.bf16 %v229_v37, %v228_v36  ;;  %v233_v43 = vld [vmem:[%s3016_s28 + $0x171] sm:$0xff]  ;;  %v231_v45 = vld [vmem:[%s3016_s28 + $0x159] sm:$0xff] }
  0x24   : > { %v3075_v41 = vpack.i.bf16 %v227_v39, %v226_v38  ;;  %v232_v42 = vld [vmem:[%s3016_s28 + $0x169] sm:$0xff]  ;;  %v230_v44 = vld [vmem:[%s3016_s28 + $0x151] sm:$0xff]  ;;  %v236_v48 = vld [vmem:[%s3016_s28 + $0x1a] sm:$0xff] }
  0x25   : > { %2248 = vrot.lane.b32.xlu1 %v3033_v16, %s2933_s29  ;;  %v3083_v46 = vpack.i.bf16 %v233_v43, %v232_v42  ;;  %v3087_v47 = vpack.i.bf16 %v231_v45, %v230_v44  ;;  %v237_v49 = vld [vmem:[%s3016_s28 + $0x22] sm:$0xff]  ;;  %v235_v51 = vld [vmem:[%s3016_s28 + $0xa] sm:$0xff]  ;;  %v241_v55 = vld [vmem:[%s3016_s28 + $0x52] sm:$0xff] }
  0x26   : > { %2243 = vrot.lane.b32.xlu0 %v2242_v17, %s2933_s29  ;;  %v234_v50 = vld [vmem:[%s3016_s28 + $0x2] sm:$0xff]  ;;  %v2307_v52 = vpack.i.bf16 %v237_v49, %v236_v48  ;;  %v240_v54 = vld [vmem:[%s3016_s28 + $0x4a] sm:$0xff]  ;;  %v238_v56 = vld [vmem:[%s3016_s28 + $0x32] sm:$0xff] }
  0x27   : > { %v2302_v53 = vpack.i.bf16 %v235_v51, %v234_v50  ;;  %v239_v57 = vld [vmem:[%s3016_s28 + $0x3a] sm:$0xff]  ;;  %v2317_v58 = vpack.i.bf16 %v241_v55, %v240_v54  ;;  %v245_v61 = vld [vmem:[%s3016_s28 + $0x82] sm:$0xff]  ;;  %v243_v63 = vld [vmem:[%s3016_s28 + $0x6a] sm:$0xff] }
  0x28   : > { %v2312_v59 = vpack.i.bf16 %v239_v57, %v238_v56  ;;  %v244_v60 = vld [vmem:[%s3016_s28 + $0x7a] sm:$0xff]  ;;  %v242_v62 = vld [vmem:[%s3016_s28 + $0x62] sm:$0xff]  ;;  %v248_v2 = vld [vmem:[%s3016_s28 + $0xaa] sm:$0xff] }
  0x29   : > { %2258 = vrot.lane.b32.xlu1 %v3042_v22, %s2933_s29  ;;  %v3108_v0 = vpack.i.bf16 %v245_v61, %v244_v60  ;;  %v3111_v1 = vpack.i.bf16 %v243_v63, %v242_v62  ;;  %v249_v3 = vld [vmem:[%s3016_s28 + $0xb2] sm:$0xff]  ;;  %v247_v5 = vld [vmem:[%s3016_s28 + $0x9a] sm:$0xff]  ;;  %v253_v9 = vld [vmem:[%s3016_s28 + $0xe2] sm:$0xff] }
  0x2a   : > { %2253 = vrot.lane.b32.xlu0 %v3045_v23, %s2933_s29  ;;  %v246_v4 = vld [vmem:[%s3016_s28 + $0x92] sm:$0xff]  ;;  %v3119_v6 = vpack.i.bf16 %v249_v3, %v248_v2  ;;  %v252_v8 = vld [vmem:[%s3016_s28 + $0xda] sm:$0xff]  ;;  %v250_v10 = vld [vmem:[%s3016_s28 + $0xc2] sm:$0xff] }
  0x2b   : > { %v3123_v7 = vpack.i.bf16 %v247_v5, %v246_v4  ;;  %v251_v11 = vld [vmem:[%s3016_s28 + $0xca] sm:$0xff]  ;;  %v3131_v12 = vpack.i.bf16 %v253_v9, %v252_v8  ;;  %v257_v15 = vld [vmem:[%s3016_s28 + $0x112] sm:$0xff]  ;;  %v255_v18 = vld [vmem:[%s3016_s28 + $0xfa] sm:$0xff] }
  0x2c   : > { %v3135_v13 = vpack.i.bf16 %v251_v11, %v250_v10  ;;  %v256_v14 = vld [vmem:[%s3016_s28 + $0x10a] sm:$0xff]  ;;  %v254_v17 = vld [vmem:[%s3016_s28 + $0xf2] sm:$0xff]  ;;  %v260_v21 = vld [vmem:[%s3016_s28 + $0x13a] sm:$0xff] }
  0x2d   : > { %2268 = vrot.lane.b32.xlu1 %v3053_v28, %s2933_s29  ;;  %v2357_v19 = vpack.i.bf16 %v257_v15, %v256_v14  ;;  %v2352_v20 = vpack.i.bf16 %v255_v18, %v254_v17  ;;  %v261_v24 = vld [vmem:[%s3016_s28 + $0x142] sm:$0xff]  ;;  %v259_v26 = vld [vmem:[%s3016_s28 + $0x12a] sm:$0xff]  ;;  %v265_v32 = vld [vmem:[%s3016_s28 + $0x172] sm:$0xff] }
  0x2e   : > { %2263 = vrot.lane.b32.xlu0 %v3057_v29, %s2933_s29  ;;  %v258_v25 = vld [vmem:[%s3016_s28 + $0x122] sm:$0xff]  ;;  %v3150_v27 = vpack.i.bf16 %v261_v24, %v260_v21  ;;  %v264_v31 = vld [vmem:[%s3016_s28 + $0x16a] sm:$0xff]  ;;  %v262_v33 = vld [vmem:[%s3016_s28 + $0x152] sm:$0xff] }
  0x2f   : > { %v3153_v30 = vpack.i.bf16 %v259_v26, %v258_v25  ;;  %v3168_v37 = vld [vmem:[%s3016_s28 + $0x30] sm:$0xff]  ;;  %v3171_v38 = vld [vmem:[%s3016_s28 + $0x38] sm:$0xff]  ;;  %v3177_v42 = vld [vmem:[%s3016_s28 + $0x20] sm:$0xff] }
  0x30   : > { %v3174_v39 = vld [vmem:[%s3016_s28 + $0x18] sm:$0xff]  ;;  %v2387_v43 = vpack.i.bf16 %v3171_v38, %v3168_v37  ;;  %v1954_v45 = vld [vmem:[%s3016_s28 + $0x60] sm:$0xff]  ;;  %v1955_v48 = vld [vmem:[%s3016_s28 + $0x68] sm:$0xff] }
  0x31   : > { %2278 = vrot.lane.b32.xlu1 %v2277_v34, %s2933_s29  ;;  %v263_v34 = vld [vmem:[%s3016_s28 + $0x15a] sm:$0xff]  ;;  %v2382_v44 = vpack.i.bf16 %v3177_v42, %v3174_v39  ;;  %v3190_v49 = vld [vmem:[%s3016_s28 + $0x48] sm:$0xff]  ;;  %v3193_v50 = vld [vmem:[%s3016_s28 + $0x50] sm:$0xff]  ;;  %v2397_v51 = vpack.i.bf16 %v1955_v48, %v1954_v45 }
  0x32   : > { %2273 = vrot.lane.b32.xlu0 %v2272_v35, %s2933_s29  ;;  %v3161_v35 = vpack.i.bf16 %v265_v32, %v264_v31  ;;  %v3165_v36 = vpack.i.bf16 %v263_v34, %v262_v33  ;;  %v3203_v54 = vld [vmem:[%s3016_s28 + $0x98] sm:$0xff]  ;;  %v1957_v56 = vld [vmem:[%s3016_s28 + $0x80] sm:$0xff]  ;;  %v3219_v60 = vld [vmem:[%s3016_s28 + $0xc8] sm:$0xff] }
  0x33   : > { %4138 = vst [vmem:[#allocation6_spill] sm:$0xff] %v3203_v54  ;;  %v1956_v55 = vld [vmem:[%s3016_s28 + $0x78] sm:$0xff]  ;;  %v3222_v61 = vld [vmem:[%s3016_s28 + $0xa8] sm:$0xff]  ;;  %v3225_v62 = vld [vmem:[%s3016_s28 + $0xb0] sm:$0xff] }
  0x34   : > { %v3237_v2 = vpack.i.bf16 %v3225_v62, %v3222_v61  ;;  %v3240_v3 = vld [vmem:[%s3016_s28 + $0xf0] sm:$0xff]  ;;  %v3243_v4 = vld [vmem:[%s3016_s28 + $0xf8] sm:$0xff]  ;;  %v3249_v8 = vld [vmem:[%s3016_s28 + $0xe0] sm:$0xff] }
  0x35   : > { %2288 = vrot.lane.b32.xlu1 %v3072_v40, %s2933_s29  ;;  %v3246_v5 = vld [vmem:[%s3016_s28 + $0xd8] sm:$0xff]  ;;  %v2427_v9 = vpack.i.bf16 %v3243_v4, %v3240_v3  ;;  %v1970_v11 = vld [vmem:[%s3016_s28 + $0x120] sm:$0xff]  ;;  %v1971_v14 = vld [vmem:[%s3016_s28 + $0x128] sm:$0xff] }
  0x36   : > { %2283 = vrot.lane.b32.xlu0 %v3075_v41, %s2933_s29  ;;  %v2422_v10 = vpack.i.bf16 %v3249_v8, %v3246_v5  ;;  %v3262_v15 = vld [vmem:[%s3016_s28 + $0x108] sm:$0xff]  ;;  %v3265_v17 = vld [vmem:[%s3016_s28 + $0x110] sm:$0xff]  ;;  %v3268_v18 = vpack.i.bf16 %v1971_v14, %v1970_v11  ;;  %v3277_v21 = vld [vmem:[%s3016_s28 + $0x158] sm:$0xff] }
  0x37   : > { %4140 = vst [vmem:[#allocation8_spill] sm:$0xff] %v3277_v21  ;;  %v1972_v24 = vld [vmem:[%s3016_s28 + $0x138] sm:$0xff]  ;;  %v1973_v25 = vld [vmem:[%s3016_s28 + $0x140] sm:$0xff]  ;;  %v3291_v32 = vld [vmem:[%s3016_s28 + $0x170] sm:$0xff] }
  0x38   : > { %v3288_v31 = vpack.i.bf16 %v1973_v25, %v1972_v24  ;;  %4141 = vst [vmem:[#allocation9_spill] sm:$0xff] %v3291_v32  ;;  %v1979_v33 = vld [vmem:[%s3016_s28 + $0x188] sm:$0xff]  ;;  %v2074_v11 = vld [vmem:[%s3016_s28 + $0x198] sm:$0xff]  ;;  %v2075_v14 = vld [vmem:[%s3016_s28 + $0x1a0] sm:$0xff] }
  0x39   : > { %2298 = vrot.lane.b32.xlu1 %v3083_v46, %s2933_s29  ;;  %v3295_v34 = vld [vmem:[%s3016_s28 + $0x168] sm:$0xff]  ;;  %v2106_v24 = vld [vmem:[%s3016_s28 + $0x199] sm:$0xff] }
  0x3a   : > { %2293 = vrot.lane.b32.xlu0 %v3087_v47, %s2933_s29  ;;  %v2010_v48 = vld [vmem:[%s3016_s28 + $0x181] sm:$0xff] }
  0x3b   : > { %v2107_v25 = vld [vmem:[%s3016_s28 + $0x1a1] sm:$0xff] }
  0x3d   : > { %2308 = vrot.lane.b32.xlu1 %v2307_v52, %s2934_s30  ;;  %v2392_v52 = vpack.i.bf16 %v3193_v50, %v3190_v49 }
  0x3e   : > { %2303 = vrot.lane.b32.xlu0 %v2302_v53, %s2934_s30  ;;  %v3200_v53 = vld [vmem:[%s3016_s28 + $0x90] sm:$0xff] }
  0x3f   : > { %4137 = vst [vmem:[#allocation5_spill] sm:$0xff] %v3200_v53  ;;  %v3210_v57 = vpack.i.bf16 %v3203_v54, %v3200_v53 }
  0x41   : > { %2318 = vrot.lane.b32.xlu1 %v2317_v58, %s2934_s30  ;;  %v3213_v58 = vpack.i.bf16 %v1957_v56, %v1956_v55  ;;  %v2042_v55 = vld [vmem:[%s3016_s28 + $0x182] sm:$0xff]  ;;  %v2043_v56 = vld [vmem:[%s3016_s28 + $0x18a] sm:$0xff] }
  0x42   : > { %2313 = vrot.lane.b32.xlu0 %v2312_v59, %s2934_s30  ;;  %v3216_v59 = vld [vmem:[%s3016_s28 + $0xc0] sm:$0xff] }
  0x43   : > { %v3231_v63 = vpack.i.bf16 %v3219_v60, %v3216_v59 }
  0x45   : > { %2328 = vrot.lane.b32.xlu1 %v3108_v0, %s2934_s30 }
  0x46   : > { %2323 = vrot.lane.b32.xlu0 %v3111_v1, %s2934_s30 }
  0x49   : > { %2338 = vrot.lane.b32.xlu1 %v3119_v6, %s2934_s30 }
  0x4a   : > { %2333 = vrot.lane.b32.xlu0 %v3123_v7, %s2934_s30 }
  0x4d   : > { %2348 = vrot.lane.b32.xlu1 %v3131_v12, %s2934_s30 }
  0x4e   : > { %2343 = vrot.lane.b32.xlu0 %v3135_v13, %s2934_s30 }
  0x51   : > { %2358 = vrot.lane.b32.xlu1 %v2357_v19, %s2934_s30  ;;  %v2432_v19 = vpack.i.bf16 %v3265_v17, %v3262_v15 }
  0x52   : > { %2353 = vrot.lane.b32.xlu0 %v2352_v20, %s2934_s30  ;;  %v3274_v20 = vld [vmem:[%s3016_s28 + $0x150] sm:$0xff] }
  0x53   : > { %4139 = vst [vmem:[#allocation7_spill] sm:$0xff] %v3274_v20  ;;  %v3285_v26 = vpack.i.bf16 %v3277_v21, %v3274_v20 }
  0x55   : > { %2368 = vrot.lane.b32.xlu1 %v3150_v27, %s2934_s30 }
  0x56   : > { %2363 = vrot.lane.b32.xlu0 %v3153_v30, %s2934_s30 }
  0x59   : > { %2378 = vrot.lane.b32.xlu1 %v3161_v35, %s2934_s30 }
  0x5a   : > { %2373 = vrot.lane.b32.xlu0 %v3165_v36, %s2934_s30  ;;  %s4085_s30 = scalar_lea.hbm %s4123_s3, %s2146_s25 }
  0x5d   : > { %2388 = vrot.lane.b32.xlu1 %v2387_v43, %s2935_s4  ;;  %v1978_v43 = vld [vmem:[%s3016_s28 + $0x180] sm:$0xff] }
  0x5e   : > { %2383 = vrot.lane.b32.xlu0 %v2382_v44, %s2935_s4  ;;  %v2457_v44 = vpack.i.bf16 %v3291_v32, %v1979_v33  ;;  %v2452_v45 = vpack.i.bf16 %v1978_v43, %v3295_v34 }
  0x61   : > { %2398 = vrot.lane.b32.xlu1 %v2397_v51, %s2935_s4  ;;  %v2011_v51 = vld [vmem:[%s3016_s28 + $0x189] sm:$0xff] }
  0x62   : > { %2393 = vrot.lane.b32.xlu0 %v2392_v52, %s2935_s4  ;;  %v2467_v52 = vpack.i.bf16 %v2011_v51, %v2010_v48  ;;  %v2139_v48 = vld [vmem:[%s3016_s28 + $0x1a2] sm:$0xff] }
  0x65   : > { %2408 = vrot.lane.b32.xlu1 %v3210_v57, %s2935_s4 }
  0x66   : > { %2403 = vrot.lane.b32.xlu0 %v3213_v58, %s2935_s4 }
  0x69   : > { %2418 = vrot.lane.b32.xlu1 %v3231_v63, %s2935_s4 }
  0x6a   : > { %2413 = vrot.lane.b32.xlu0 %v3237_v2, %s2935_s4 }
  0x6d   : > { %2428 = vrot.lane.b32.xlu1 %v2427_v9, %s2935_s4  ;;  %v2477_v9 = vpack.i.bf16 %v2043_v56, %v2042_v55 }
  0x6e   : > { %2423 = vrot.lane.b32.xlu0 %v2422_v10, %s2935_s4 }
  0x71   : > { %2438 = vrot.lane.b32.xlu1 %v3268_v18, %s2935_s4 }
  0x72   : > { %2433 = vrot.lane.b32.xlu0 %v2432_v19, %s2935_s4  ;;  %v2487_v19 = vpack.i.bf16 %v2075_v14, %v2074_v11 }
  0x75   : > { %2448 = vrot.lane.b32.xlu1 %v3285_v26, %s2935_s4 }
  0x76   : > { %2443 = vrot.lane.b32.xlu0 %v3288_v31, %s2935_s4 }
  0x79   : > { %2458 = vrot.lane.b32.xlu1 %v2457_v44, %s2935_s4  ;;  %v2497_v44 = vpack.i.bf16 %v2107_v25, %v2106_v24 }
  0x7a   : > { %2453 = vrot.lane.b32.xlu0 %v2452_v45, %s2935_s4  ;;  %v2138_v45 = vld [vmem:[%s3016_s28 + $0x19a] sm:$0xff]  ;;  %s1869_s4 = scalar_lea.sflag [#allocation3], %s161_s20 }
  0x7b   : > { %v2507_v51 = vpack.i.bf16 %v2139_v48, %v2138_v45 }
  0x7d   : > { %2468 = vrot.lane.b32.xlu1 %v2467_v52, %s2936_s5 }
  0x7e   : > { %2463 = vrot.lane.b32.xlu0 %v3057_v29, %s2936_s5 }
  0x81   : > { %2478 = vrot.lane.b32.xlu1 %v2477_v9, %s2937_s6 }
  0x82   : > { %2473 = vrot.lane.b32.xlu0 %v3135_v13, %s2937_s6 }
  0x85   : > { %2488 = vrot.lane.b32.xlu1 %v2487_v19, %s2938_s7 }
  0x86   : > { %2483 = vrot.lane.b32.xlu0 %v2422_v10, %s2938_s7 }
  0x89   : > { %2498 = vrot.lane.b32.xlu1 %v2497_v44, %s2939_s8 }
  0x8a   : > { %2493 = vrot.lane.b32.xlu0 %v3053_v28, %s2939_s8  ;;  %v2537_v28 = vpack.i.bf16 %v1979_v33, %v1978_v43 }
  0x8d   : > { %2508 = vrot.lane.b32.xlu1 %v2507_v51, %s2940_s9 }
  0x8e   : > { %2503 = vrot.lane.b32.xlu0 %v3131_v12, %s2940_s9 }
  0x8f   : > { %v3330_v55 = vpop.permute.xlu1 %2233 }
  0x90   : > { %v2224_v56 = vpop.permute.xlu0 %2223 }
  0x91   : > { %2518 = vrot.lane.b32.xlu1 %v3083_v46, %s2936_s5  ;;  %v2226_v51 = vunpack.i.h.bf16 %v2224_v56 }
  0x92   : > { %2513 = vrot.lane.b32.xlu0 %v3042_v22, %s2936_s5 }
  0x93   : > { %v3336_v10 = vpop.permute.xlu1 %2238 }
  0x94   : > { %v2229_v11 = vpop.permute.xlu0 %2228  ;;  %v2241_v20 = vunpack.i.h.bf16 %v3336_v10 }
  0x95   : > { %2528 = vrot.lane.b32.xlu1 %v3161_v35, %s2937_s6  ;;  %v2231_v45 = vunpack.i.h.bf16 %v2229_v11  ;;  %v2230_v48 = vunpack.i.l.bf16 %v2229_v11  ;;  %v2240_v11 = vunpack.i.l.bf16 %v3336_v10 }
  0x96   : > { %2523 = vrot.lane.b32.xlu0 %v3119_v6, %s2937_s6 }
  0x97   : > { %v3342_v12 = vpop.permute.xlu1 %2248 }
  0x98   : > { %4142 = vst [vmem:[#allocation10_spill] sm:$0xff] %v3342_v12  ;;  %v3344_v14 = vpop.permute.xlu0 %2243  ;;  %v171_v12 = vld [vmem:[%s3016_s28 + $0x8] sm:$0xff] }
  0x99   : > { %4143 = vst [vmem:[#allocation11_spill] sm:$0xff] %v3344_v14  ;;  %2538 = vrot.lane.b32.xlu1 %v2537_v28, %s2938_s7  ;;  %v2225_v28 = vunpack.i.l.bf16 %v2224_v56  ;;  %v2235_v14 = vunpack.i.l.bf16 %v3330_v55  ;;  %v1487_v56 = vsel %vm1484_vm0, %v3174_v39, %v2230_v48 }
  0x9a   : > { %2533 = vrot.lane.b32.xlu0 %v3231_v63, %s2938_s7 }
  0x9b   : > { %v3349_v19 = vpop.permute.xlu1 %2258 }
  0x9c   : > { %v3351_v24 = vpop.permute.xlu0 %2253 }
  0x9d   : > { %4144 = vst [vmem:[#allocation12_spill] sm:$0xff] %v3351_v24  ;;  %2548 = vrot.lane.b32.xlu1 %v2467_v52, %s2939_s8 }
  0x9e   : > { %2543 = vrot.lane.b32.xlu0 %v3057_v29, %s2939_s8 }
  0x9f   : > { %v3356_v33 = vpop.permute.xlu1 %2268 }
  0xa0   : > { %v3358_v43 = vpop.permute.xlu0 %2263 }
  0xa1   : > { %2558 = vrot.lane.b32.xlu1 %v2477_v9, %s2940_s9 }
  0xa2   : > { %2553 = vrot.lane.b32.xlu0 %v3135_v13, %s2940_s9  ;;  %v2587_v13 = vpack.i.bf16 %v3291_v32, %v3295_v34  ;;  %v1486_v32 = vsel %vm1484_vm0, %v171_v12, %v2226_v51  ;;  %v1491_v12 = vsel %vm1484_vm0, %v3190_v49, %v2240_v11 }
  0xa3   : > { %v3363_v25 = vpop.permute.xlu1 %2278 }
  0xa4   : > { %v3365_v63 = vpop.permute.xlu0 %2273 }
  0xa5   : > { %2568 = vrot.lane.b32.xlu1 %v3087_v47, %s2936_s5 }
  0xa6   : > { %2563 = vrot.lane.b32.xlu0 %v3045_v23, %s2936_s5 }
  0xa7   : > { %v3371_v29 = vpop.permute.xlu1 %2288 }
  0xa8   : > { %4145 = vst [vmem:[#allocation13_spill] sm:$0xff] %v3371_v29  ;;  %v3373_v52 = vpop.permute.xlu0 %2283  ;;  %v170_v29 = vld [vmem:[%s3016_s28] sm:$0xff] }
  0xa9   : > { %4146 = vst [vmem:[#allocation14_spill] sm:$0xff] %v3373_v52  ;;  %2578 = vrot.lane.b32.xlu1 %v3165_v36, %s2937_s6  ;;  %v2236_v52 = vunpack.i.h.bf16 %v3330_v55  ;;  %v1485_v55 = vsel %vm1484_vm0, %v170_v29, %v2225_v28 }
  0xaa   : > { %2573 = vrot.lane.b32.xlu0 %v3123_v7, %s2937_s6 }
  0xab   : > { %v3381_v9 = vpop.permute.xlu1 %2298 }
  0xac   : > { %v3383_v44 = vpop.permute.xlu0 %2293 }
  0xad   : > { %4147 = vst [vmem:[#allocation15_spill] sm:$0xff] %v3383_v44  ;;  %2588 = vrot.lane.b32.xlu1 %v2587_v13, %s2938_s7 }
  0xae   : > { %2583 = vrot.lane.b32.xlu0 %v3237_v2, %s2938_s7  ;;  %v1488_v2 = vsel %vm1484_vm0, %v3177_v42, %v2231_v45 }
  0xaf   : > { %v2309_v21 = vpop.permute.xlu1 %2308 }
  0xb0   : > { %v2311_v54 = vunpack.i.h.bf16 %v2309_v21  ;;  %v2310_v13 = vunpack.i.l.bf16 %v2309_v21  ;;  %v2304_v53 = vpop.permute.xlu0 %2303 }
  0xb1   : > { %v2306_v44 = vunpack.i.h.bf16 %v2304_v53  ;;  %v2305_v24 = vunpack.i.l.bf16 %v2304_v53  ;;  %2598 = vrot.lane.b32.xlu1 %v3083_v46, %s2939_s8 }
  0xb2   : > { %v3403_v10 = vsel %vm1517_vm1, %v1487_v56, %v2310_v13  ;;  %v3406_v21 = vsel %vm1517_vm1, %v1488_v2, %v2311_v54  ;;  %2593 = vrot.lane.b32.xlu0 %v3042_v22, %s2939_s8  ;;  %v1492_v54 = vsel %vm1484_vm0, %v3193_v50, %v2241_v20  ;;  %v1489_v22 = vsel %vm1484_vm0, %v3168_v37, %v2235_v14 }
  0xb3   : > { %v3411_v39 = vsel %vm1517_vm1, %v1485_v55, %v2305_v24  ;;  %v3414_v42 = vsel %vm1517_vm1, %v1486_v32, %v2306_v44  ;;  %v2319_v46 = vpop.permute.xlu1 %2318  ;;  %v1490_v32 = vsel %vm1484_vm0, %v3171_v38, %v2236_v52  ;;  %v2271_v38 = vunpack.i.h.bf16 %v3356_v33 }
  0xb4   : > { %v2321_v53 = vunpack.i.h.bf16 %v2319_v46  ;;  %v2320_v29 = vunpack.i.l.bf16 %v2319_v46  ;;  %v2314_v45 = vpop.permute.xlu0 %2313  ;;  %v2266_v14 = vunpack.i.h.bf16 %v3358_v43  ;;  %v2265_v52 = vunpack.i.l.bf16 %v3358_v43 }
  0xb5   : > { %v2316_v48 = vunpack.i.h.bf16 %v2314_v45  ;;  %v2315_v51 = vunpack.i.l.bf16 %v2314_v45  ;;  %2608 = vrot.lane.b32.xlu1 %v3161_v35, %s2940_s9 }
  0xb6   : > { %v3427_v24 = vsel %vm1517_vm1, %v1491_v12, %v2320_v29  ;;  %v3430_v44 = vsel %vm1517_vm1, %v1492_v54, %v2321_v53  ;;  %2603 = vrot.lane.b32.xlu0 %v3119_v6, %s2940_s9  ;;  %v2270_v6 = vunpack.i.l.bf16 %v3356_v33  ;;  %v1501_v11 = vsel %vm1484_vm0, %v3216_v59, %v2265_v52 }
  0xb7   : > { %v3435_v49 = vsel %vm1517_vm1, %v1489_v22, %v2315_v51  ;;  %v3438_v35 = vsel %vm1517_vm1, %v1490_v32, %v2316_v48  ;;  %v3440_v50 = vpop.permute.xlu1 %2328  ;;  %v1502_v43 = vsel %vm1484_vm0, %v3219_v60, %v2266_v14 }
  0xb8   : > { %v3442_v37 = vpop.permute.xlu0 %2323 }
  0xb9   : > { %2618 = vrot.lane.b32.xlu1 %v3072_v40, %s2936_s5  ;;  %v1504_v40 = vsel %vm1484_vm0, %v3249_v8, %v2271_v38  ;;  %v2275_v8 = vunpack.i.l.bf16 %v3365_v63 }
  0xba   : > { %2613 = vrot.lane.b32.xlu0 %v3033_v16, %s2936_s5  ;;  %v1503_v16 = vsel %vm1484_vm0, %v3246_v5, %v2270_v6  ;;  %v2276_v5 = vunpack.i.h.bf16 %v3365_v63  ;;  %v1987_v6 = vld [vmem:[%s3016_s28 + $0x69] sm:$0xff] }
  0xbb   : > { %v3450_v20 = vpop.permute.xlu1 %2338  ;;  %v1505_v51 = vsel %vm1484_vm0, %v3240_v3, %v2275_v8  ;;  %v1986_v3 = vld [vmem:[%s3016_s28 + $0x61] sm:$0xff] }
  0xbc   : > { %v3454_v28 = vpop.permute.xlu0 %2333  ;;  %v1506_v22 = vsel %vm1484_vm0, %v3243_v4, %v2276_v5  ;;  %v3522_v14 = vpack.i.bf16 %v1987_v6, %v1986_v3 }
  0xbd   : > { %2628 = vrot.lane.b32.xlu1 %v3150_v27, %s2937_s6  ;;  %v2281_v27 = vunpack.i.h.bf16 %v3363_v25 }
  0xbe   : > { %2623 = vrot.lane.b32.xlu0 %v3108_v0, %s2937_s6  ;;  %v2280_v0 = vunpack.i.l.bf16 %v3363_v25 }
  0xbf   : > { %v2349_v33 = vpop.permute.xlu1 %2348  ;;  %v1508_v54 = vsel %vm1484_vm0, %v3265_v17, %v2281_v27  ;;  %v2082_v27 = vld [vmem:[%s3016_s28 + $0x79] sm:$0xff] }
  0xc0   : > { %v2351_v13 = vunpack.i.h.bf16 %v2349_v33  ;;  %v2350_v56 = vunpack.i.l.bf16 %v2349_v33  ;;  %v2344_v2 = vpop.permute.xlu0 %2343  ;;  %v1507_v12 = vsel %vm1484_vm0, %v3262_v15, %v2280_v0  ;;  %v2083_v0 = vld [vmem:[%s3016_s28 + $0x81] sm:$0xff] }
  0xc1   : > { %v2346_v55 = vunpack.i.h.bf16 %v2344_v2  ;;  %v2345_v46 = vunpack.i.l.bf16 %v2344_v2  ;;  %2638 = vrot.lane.b32.xlu1 %v3285_v26, %s2938_s7 }
  0xc2   : > { %v3475_v59 = vsel %vm1517_vm1, %v1503_v16, %v2350_v56  ;;  %v3478_v60 = vsel %vm1517_vm1, %v1504_v40, %v2351_v13  ;;  %2633 = vrot.lane.b32.xlu0 %v3210_v57, %s2938_s7  ;;  %v2098_v13 = vld [vmem:[%s3016_s28 + $0x139] sm:$0xff]  ;;  %v2099_v56 = vld [vmem:[%s3016_s28 + $0x141] sm:$0xff] }
  0xc3   : > { %v3483_v25 = vsel %vm1517_vm1, %v1501_v11, %v2345_v46  ;;  %v3486_v53 = vsel %vm1517_vm1, %v1502_v43, %v2346_v55  ;;  %v2359_v26 = vpop.permute.xlu1 %2358 }
  0xc4   : > { %v2361_v29 = vunpack.i.h.bf16 %v2359_v26  ;;  %v2360_v45 = vunpack.i.l.bf16 %v2359_v26  ;;  %v2354_v63 = vpop.permute.xlu0 %2353  ;;  %v2692_v26 = vpack.i.bf16 %v2083_v0, %v2082_v27 }
  0xc5   : > { %v2356_v48 = vunpack.i.h.bf16 %v2354_v63  ;;  %v2355_v57 = vunpack.i.l.bf16 %v2354_v63  ;;  %2648 = vrot.lane.b32.xlu1 %v3087_v47, %s2939_s8 }
  0xc6   : > { %v3499_v32 = vsel %vm1517_vm1, %v1507_v12, %v2360_v45  ;;  %v3502_v38 = vsel %vm1517_vm1, %v1508_v54, %v2361_v29  ;;  %2643 = vrot.lane.b32.xlu0 %v3045_v23, %s2939_s8  ;;  %v2130_v29 = vld [vmem:[%s3016_s28 + $0x13a] sm:$0xff]  ;;  %v2131_v45 = vld [vmem:[%s3016_s28 + $0x142] sm:$0xff] }
  0xc7   : > { %v3507_v15 = vsel %vm1517_vm1, %v1505_v51, %v2355_v57  ;;  %v3510_v47 = vsel %vm1517_vm1, %v1506_v22, %v2356_v48  ;;  %v3512_v17 = vpop.permute.xlu1 %2368  ;;  %v2115_v12 = vld [vmem:[%s3016_s28 + $0x82] sm:$0xff]  ;;  %v2001_v57 = vld [vmem:[%s3016_s28 + $0x111] sm:$0xff] }
  0xc8   : > { %v3516_v4 = vpop.permute.xlu0 %2363  ;;  %v2000_v48 = vld [vmem:[%s3016_s28 + $0x109] sm:$0xff]  ;;  %v1985_v22 = vld [vmem:[%s3016_s28 + $0x51] sm:$0xff] }
  0xc9   : > { %2658 = vrot.lane.b32.xlu1 %v3165_v36, %s2940_s9  ;;  %v1984_v51 = vld [vmem:[%s3016_s28 + $0x49] sm:$0xff]  ;;  %v3595_v6 = vpack.i.bf16 %v2001_v57, %v2000_v48  ;;  %v2096_v48 = vld [vmem:[%s3016_s28 + $0x121] sm:$0xff] }
  0xca   : > { %2653 = vrot.lane.b32.xlu0 %v3123_v7, %s2940_s9  ;;  %v2097_v57 = vld [vmem:[%s3016_s28 + $0x129] sm:$0xff] }
  0xcb   : > { %v3524_v23 = vpop.permute.xlu1 %2378 }
  0xcc   : > { %v3526_v52 = vpop.permute.xlu0 %2373 }
  0xcd   : > { %2668 = vrot.lane.b32.xlu1 %v3075_v41, %s2936_s5 }
  0xce   : > { %2663 = vrot.lane.b32.xlu0 %v3522_v14, %s2936_s5 }
  0xcf   : > { %v2389_v36 = vpop.permute.xlu1 %2388 }
  0xd0   : > { %v2391_v16 = vunpack.i.h.bf16 %v2389_v36  ;;  %v2390_v7 = vunpack.i.l.bf16 %v2389_v36  ;;  %v2384_v40 = vpop.permute.xlu0 %2383  ;;  %v3598_v36 = vpack.i.bf16 %v1985_v22, %v1984_v51 }
  0xd1   : > { %v2386_v33 = vunpack.i.h.bf16 %v2384_v40  ;;  %v2385_v11 = vunpack.i.l.bf16 %v2384_v40  ;;  %2678 = vrot.lane.b32.xlu1 %v3153_v30, %s2937_s6 }
  0xd2   : > { %v3536_v43 = vsel %vm1550_vm2, %v3403_v10, %v2390_v7  ;;  %v3540_v41 = vsel %vm1550_vm2, %v3406_v21, %v2391_v16  ;;  %2673 = vrot.lane.b32.xlu0 %v3111_v1, %s2937_s6  ;;  %v2032_v16 = vld [vmem:[%s3016_s28 + $0x10a] sm:$0xff]  ;;  %v2033_v7 = vld [vmem:[%s3016_s28 + $0x112] sm:$0xff] }
  0xd3   : > { %v3548_v2 = vsel %vm1550_vm2, %v3411_v39, %v2385_v11  ;;  %v3552_v30 = vsel %vm1550_vm2, %v3414_v42, %v2386_v33  ;;  %v2399_v10 = vpop.permute.xlu1 %2398  ;;  %v2697_v39 = vpack.i.bf16 %v2099_v56, %v2098_v13  ;;  %v2016_v33 = vld [vmem:[%s3016_s28 + $0x4a] sm:$0xff]  ;;  %v2017_v11 = vld [vmem:[%s3016_s28 + $0x52] sm:$0xff] }
  0xd4   : > { %4148 = vst [vmem:[#allocation16_spill] sm:$0xff] %v3548_v2  ;;  %4149 = vst [vmem:[#allocation17_spill] sm:$0xff] %v3552_v30  ;;  %v2401_v21 = vunpack.i.h.bf16 %v2399_v10  ;;  %v2400_v55 = vunpack.i.l.bf16 %v2399_v10  ;;  %v2394_v1 = vpop.permute.xlu0 %2393 }
  0xd5   : > { %v2396_v46 = vunpack.i.h.bf16 %v2394_v1  ;;  %v2395_v5 = vunpack.i.l.bf16 %v2394_v1  ;;  %2688 = vrot.lane.b32.xlu1 %v3288_v31, %s2938_s7 }
  0xd6   : > { %v3560_v8 = vsel %vm1550_vm2, %v3427_v24, %v2400_v55  ;;  %v3564_v42 = vsel %vm1550_vm2, %v3430_v44, %v2401_v21  ;;  %2683 = vrot.lane.b32.xlu0 %v3213_v58, %s2938_s7  ;;  %v2114_v44 = vld [vmem:[%s3016_s28 + $0x7a] sm:$0xff]  ;;  %v2707_v58 = vpack.i.bf16 %v2131_v45, %v2130_v29  ;;  %v3606_v21 = vpack.i.bf16 %v2033_v7, %v2032_v16  ;;  %v2049_v29 = vld [vmem:[%s3016_s28 + $0x68] sm:$0xff] }
  0xd7   : > { %v3572_v31 = vsel %vm1550_vm2, %v3435_v49, %v2395_v5  ;;  %v3576_v24 = vsel %vm1550_vm2, %v3438_v35, %v2396_v46  ;;  %v3578_v63 = vpop.permute.xlu1 %2408  ;;  %v2702_v49 = vpack.i.bf16 %v2115_v12, %v2114_v44  ;;  %v3618_v46 = vpack.i.bf16 %v2017_v11, %v2016_v33  ;;  %v2129_v7 = vld [vmem:[%s3016_s28 + $0x12a] sm:$0xff] }
  0xd8   : > { %v3582_v54 = vpop.permute.xlu0 %2403  ;;  %v2747_v16 = vpack.i.bf16 %v2097_v57, %v2096_v48  ;;  %v2113_v33 = vld [vmem:[%s3016_s28 + $0x6a] sm:$0xff] }
  0xd9   : > { %2698 = vrot.lane.b32.xlu1 %v2697_v39, %s2939_s8  ;;  %v2063_v57 = vld [vmem:[%s3016_s28 + $0x110] sm:$0xff] }
  0xda   : > { %2693 = vrot.lane.b32.xlu0 %v2692_v26, %s2939_s8  ;;  %v2048_v26 = vld [vmem:[%s3016_s28 + $0x60] sm:$0xff] }
  0xdb   : > { %v3588_v35 = vpop.permute.xlu1 %2418 }
  0xdc   : > { %v3592_v3 = vpop.permute.xlu0 %2413  ;;  %v2421_v30 = vunpack.i.h.bf16 %v3588_v35 }
  0xdd   : > { %2708 = vrot.lane.b32.xlu1 %v2707_v58, %s2940_s9 }
  0xde   : > { %2703 = vrot.lane.b32.xlu0 %v2702_v49, %s2940_s9  ;;  %v2732_v49 = vpack.i.bf16 %v2049_v29, %v2048_v26  ;;  %v2030_v29 = vld [vmem:[%s3016_s28 + $0xf2] sm:$0xff] }
  0xdf   : > { %v2429_v40 = vpop.permute.xlu1 %2428 }
  0xe0   : > { %v2431_v13 = vunpack.i.h.bf16 %v2429_v40  ;;  %v2430_v56 = vunpack.i.l.bf16 %v2429_v40  ;;  %v2424_v10 = vpop.permute.xlu0 %2423  ;;  %v2112_v40 = vld [vmem:[%s3016_s28 + $0x62] sm:$0xff] }
  0xe1   : > { %v2426_v27 = vunpack.i.h.bf16 %v2424_v10  ;;  %v2425_v0 = vunpack.i.l.bf16 %v2424_v10  ;;  %2718 = vrot.lane.b32.xlu1 %v3595_v6, %s2936_s5  ;;  %v1999_v10 = vld [vmem:[%s3016_s28 + $0xf9] sm:$0xff] }
  0xe2   : > { %v3610_v55 = vsel %vm1550_vm2, %v3475_v59, %v2430_v56  ;;  %v3614_v1 = vsel %vm1550_vm2, %v3478_v60, %v2431_v13  ;;  %2713 = vrot.lane.b32.xlu0 %v3598_v36, %s2936_s5  ;;  %v2752_v13 = vpack.i.bf16 %v2113_v33, %v2112_v40  ;;  %v1998_v56 = vld [vmem:[%s3016_s28 + $0xf1] sm:$0xff]  ;;  %v2300_v40 = vunpack.i.l.bf16 %v3381_v9 }
  0xe3   : > { %v3622_v5 = vsel %vm1550_vm2, %v3483_v25, %v2425_v0  ;;  %v3626_v39 = vsel %vm1550_vm2, %v3486_v53, %v2426_v27  ;;  %v2439_v59 = vpop.permute.xlu1 %2438  ;;  %v1982_v0 = vld [vmem:[%s3016_s28 + $0x31] sm:$0xff]  ;;  %v2341_v33 = vunpack.i.h.bf16 %v3450_v20 }
  0xe4   : > { %4150 = vst [vmem:[#allocation18_spill] sm:$0xff] %v3622_v5  ;;  %4151 = vst [vmem:[#allocation19_spill] sm:$0xff] %v3626_v39  ;;  %v2441_v60 = vunpack.i.h.bf16 %v2439_v59  ;;  %v2440_v45 = vunpack.i.l.bf16 %v2439_v59  ;;  %v2434_v44 = vpop.permute.xlu0 %2433  ;;  %v1983_v59 = vld [vmem:[%s3016_s28 + $0x39] sm:$0xff] }
  0xe5   : > { %v2436_v12 = vunpack.i.h.bf16 %v2434_v44  ;;  %v2435_v58 = vunpack.i.l.bf16 %v2434_v44  ;;  %2728 = vrot.lane.b32.xlu1 %v3606_v21, %s2937_s6  ;;  %v2014_v44 = vld [vmem:[%s3016_s28 + $0x32] sm:$0xff]  ;;  %v3691_v48 = vpack.i.bf16 %v1983_v59, %v1982_v0 }
  0xe6   : > { %v3634_v25 = vsel %vm1550_vm2, %v3499_v32, %v2440_v45  ;;  %v3638_v53 = vsel %vm1550_vm2, %v3502_v38, %v2441_v60  ;;  %2723 = vrot.lane.b32.xlu0 %v3618_v46, %s2937_s6  ;;  %v2031_v60 = vld [vmem:[%s3016_s28 + $0xfa] sm:$0xff]  ;;  %v3681_v45 = vpack.i.bf16 %v1999_v10, %v1998_v56  ;;  %v2381_v56 = vunpack.i.h.bf16 %v3524_v23 }
  0xe7   : > { %v3646_v51 = vsel %vm1550_vm2, %v3507_v15, %v2435_v58  ;;  %v3650_v32 = vsel %vm1550_vm2, %v3510_v47, %v2436_v12  ;;  %v3652_v22 = vpop.permute.xlu1 %2448  ;;  %v2128_v15 = vld [vmem:[%s3016_s28 + $0x122] sm:$0xff]  ;;  %v2261_v58 = vunpack.i.h.bf16 %v3349_v19  ;;  %v3706_v0 = vpack.i.bf16 %v2031_v60, %v2030_v29 }
  0xe8   : > { %v3654_v38 = vpop.permute.xlu0 %2443  ;;  %v3686_v12 = vld [vmem:[%s3016_s28 + $0x108] sm:$0xff] }
  0xe9   : > { %2738 = vrot.lane.b32.xlu1 %v3268_v18, %s2938_s7  ;;  %v2757_v18 = vpack.i.bf16 %v2129_v7, %v2128_v15  ;;  %v3698_v15 = vld [vmem:[%s3016_s28 + $0x50] sm:$0xff]  ;;  %v2301_v7 = vunpack.i.h.bf16 %v3381_v9  ;;  %v2420_v9 = vunpack.i.l.bf16 %v3588_v35  ;;  %v1500_v29 = vsel %vm1484_vm0, %v3225_v62, %v2261_v58 }
  0xea   : > { %2733 = vrot.lane.b32.xlu0 %v2732_v49, %s2938_s7  ;;  %v2260_v49 = vunpack.i.l.bf16 %v3349_v19  ;;  %v1515_v35 = vsel %vm1484_vm0, %v3295_v34, %v2300_v40 }
  0xeb   : > { %v3661_v47 = vpop.permute.xlu1 %2458 }
  0xec   : > { %v3665_v11 = vpop.permute.xlu0 %2453  ;;  %v2460_v60 = vunpack.i.l.bf16 %v3661_v47 }
  0xed   : > { %2748 = vrot.lane.b32.xlu1 %v2747_v16, %s2939_s8  ;;  %v3695_v16 = vld [vmem:[%s3016_s28 + $0x48] sm:$0xff] }
  0xee   : > { %2743 = vrot.lane.b32.xlu0 %v3522_v14, %s2939_s8  ;;  %v2015_v14 = vld [vmem:[%s3016_s28 + $0x3a] sm:$0xff]  ;;  %v2782_v2 = vpack.i.bf16 %v3698_v15, %v3695_v16 }
  0xef   : > { %v3672_v27 = vpop.permute.xlu1 %2468  ;;  %v3708_v59 = vpack.i.bf16 %v2015_v14, %v2014_v44  ;;  %v2456_v44 = vunpack.i.h.bf16 %v3665_v11  ;;  %v4152_v14 = vld [vmem:[#allocation9_spill] sm:$0xff] }
  0xf0   : > { %v3676_v26 = vpop.permute.xlu0 %2463  ;;  %v2471_v16 = vunpack.i.h.bf16 %v3672_v27  ;;  %v2470_v15 = vunpack.i.l.bf16 %v3672_v27 }
  0xf1   : > { %2758 = vrot.lane.b32.xlu1 %v2757_v18, %s2940_s9  ;;  %v2340_v18 = vunpack.i.l.bf16 %v3450_v20  ;;  %v2787_v20 = vpack.i.bf16 %v2063_v57, %v3686_v12  ;;  %v1516_v12 = vsel %vm1484_vm0, %v4152_v14, %v2301_v7  ;;  %v2466_v7 = vunpack.i.h.bf16 %v3676_v26 }
  0xf2   : > { %2753 = vrot.lane.b32.xlu0 %v2752_v13, %s2940_s9  ;;  %v2380_v13 = vunpack.i.l.bf16 %v3524_v23  ;;  %v1499_v23 = vsel %vm1484_vm0, %v3222_v61, %v2260_v49  ;;  %v1533_v61 = vsel %vm1517_vm1, %v1500_v29, %v2341_v33  ;;  %v1549_v58 = vsel %vm1517_vm1, %v1516_v12, %v2381_v56 }
  0xf3   : > { %v2479_v19 = vpop.permute.xlu1 %2478  ;;  %v1532_v57 = vsel %vm1517_vm1, %v1499_v23, %v2340_v18  ;;  %v1566_v40 = vsel %vm1550_vm2, %v1533_v61, %v2421_v30  ;;  %v2465_v18 = vunpack.i.l.bf16 %v3676_v26  ;;  %v1582_v33 = vsel %vm1550_vm2, %v1549_v58, %v2460_v60 }
  0xf4   : > { %v2474_v10 = vpop.permute.xlu0 %2473  ;;  %v1548_v62 = vsel %vm1517_vm1, %v1515_v35, %v2380_v13  ;;  %v1565_v34 = vsel %vm1550_vm2, %v1532_v57, %v2420_v9  ;;  %v2481_v13 = vunpack.i.h.bf16 %v2479_v19  ;;  %v2480_v23 = vunpack.i.l.bf16 %v2479_v19 }
  0xf5   : > { %2768 = vrot.lane.b32.xlu1 %v3681_v45, %s2936_s5  ;;  %v1581_v56 = vsel %vm1550_vm2, %v1548_v62, %v2456_v44  ;;  %v2476_v27 = vunpack.i.h.bf16 %v2474_v10  ;;  %v2475_v9 = vunpack.i.l.bf16 %v2474_v10  ;;  %v1615_v14 = vsel %vm1583_vm3, %v1582_v33, %v2471_v16 }
  0xf6   : > { %2763 = vrot.lane.b32.xlu0 %v3691_v48, %s2936_s5  ;;  %v1614_v26 = vsel %vm1583_vm3, %v1581_v56, %v2470_v15  ;;  %v1598_v44 = vsel %vm1583_vm3, %v1565_v34, %v2465_v18  ;;  %v1599_v19 = vsel %vm1583_vm3, %v1566_v40, %v2466_v7 }
  0xf7   : > { %v2489_v49 = vpop.permute.xlu1 %2488  ;;  %v1647_v10 = vsel %vm1616_vm4, %v1614_v26, %v2480_v23  ;;  %v1631_v16 = vsel %vm1616_vm4, %v1598_v44, %v2475_v9  ;;  %v1996_v26 = vld [vmem:[%s3016_s28 + $0xd9] sm:$0xff]  ;;  %v1981_v44 = vld [vmem:[%s3016_s28 + $0x21] sm:$0xff] }
  0xf8   : > { %v2484_v39 = vpop.permute.xlu0 %2483  ;;  %v2491_v30 = vunpack.i.h.bf16 %v2489_v49  ;;  %v2490_v29 = vunpack.i.l.bf16 %v2489_v49  ;;  %v1648_v49 = vsel %vm1616_vm4, %v1615_v14, %v2481_v13 }
  0xf9   : > { %2778 = vrot.lane.b32.xlu1 %v3706_v0, %s2937_s6  ;;  %v2486_v12 = vunpack.i.h.bf16 %v2484_v39  ;;  %v2485_v57 = vunpack.i.l.bf16 %v2484_v39  ;;  %v1632_v39 = vsel %vm1616_vm4, %v1599_v19, %v2476_v27 }
  0xfa   : > { %2773 = vrot.lane.b32.xlu0 %v3708_v59, %s2937_s6  ;;  %v1680_v15 = vsel %vm1649_vm5, %v1647_v10, %v2490_v29  ;;  %v1681_v34 = vsel %vm1649_vm5, %v1648_v49, %v2491_v30  ;;  %v2012_v49 = vld [vmem:[%s3016_s28 + $0x1a] sm:$0xff] }
  0xfb   : > { %v2499_v35 = vpop.permute.xlu1 %2498  ;;  %v1665_v7 = vsel %vm1649_vm5, %v1632_v39, %v2486_v12  ;;  %v4153_v39 = vld [vmem:[#allocation12_spill] sm:$0xff] }
  0xfc   : > { %v2494_v60 = vpop.permute.xlu0 %2493  ;;  %v2501_v61 = vunpack.i.h.bf16 %v2499_v35  ;;  %v2500_v62 = vunpack.i.l.bf16 %v2499_v35 }
  0xfd   : > { %2788 = vrot.lane.b32.xlu1 %v2787_v20, %s2938_s7  ;;  %v2496_v58 = vunpack.i.h.bf16 %v2494_v60  ;;  %v2495_v5 = vunpack.i.l.bf16 %v2494_v60  ;;  %v1664_v20 = vsel %vm1649_vm5, %v1631_v16, %v2485_v57  ;;  %v1980_v60 = vld [vmem:[%s3016_s28 + $0x19] sm:$0xff]  ;;  %v3787_v16 = vld [vmem:[%s3016_s28 + $0xf0] sm:$0xff] }
  0xfe   : > { %2783 = vrot.lane.b32.xlu0 %v2782_v2, %s2938_s7  ;;  %v1713_v23 = vsel %vm1682_vm6, %v1680_v15, %v2500_v62  ;;  %v1714_v27 = vsel %vm1682_vm6, %v1681_v34, %v2501_v61  ;;  %v2028_v61 = vld [vmem:[%s3016_s28 + $0xda] sm:$0xff]  ;;  %v2029_v62 = vld [vmem:[%s3016_s28 + $0xe2] sm:$0xff]  ;;  %v2256_v15 = vunpack.i.h.bf16 %v4153_v39  ;;  %v2255_v34 = vunpack.i.l.bf16 %v4153_v39 }
  0xff   : > { %v2509_v40 = vpop.permute.xlu1 %2508  ;;  %v1697_v29 = vsel %vm1682_vm6, %v1664_v20, %v2495_v5  ;;  %v1698_v35 = vsel %vm1682_vm6, %v1665_v7, %v2496_v58  ;;  %v2013_v58 = vld [vmem:[%s3016_s28 + $0x22] sm:$0xff]  ;;  %v2812_v20 = vpack.i.bf16 %v1981_v44, %v1980_v60  ;;  %v2061_v7 = vld [vmem:[%s3016_s28 + $0xf8] sm:$0xff] }
 0x100   : > { %v2511_v18 = vunpack.i.h.bf16 %v2509_v40  ;;  %v2510_v33 = vunpack.i.l.bf16 %v2509_v40  ;;  %v2504_v56 = vpop.permute.xlu0 %2503  ;;  %v4156_v60 = vld [vmem:[#allocation6_spill] sm:$0xff] }
 0x101   : > { %v2506_v13 = vunpack.i.h.bf16 %v2504_v56  ;;  %v2505_v2 = vunpack.i.l.bf16 %v2504_v56  ;;  %2798 = vrot.lane.b32.xlu1 %v3595_v6, %s2939_s8  ;;  %v1997_v6 = vld [vmem:[%s3016_s28 + $0xe1] sm:$0xff]  ;;  %v1498_v44 = vsel %vm1484_vm0, %v4156_v60, %v2256_v15 }
 0x102   : > { %2793 = vrot.lane.b32.xlu0 %v3598_v36, %s2939_s8  ;;  %v1746_v9 = vsel %vm1715_vm7, %v1713_v23, %v2510_v33  ;;  %v1747_v30 = vsel %vm1715_vm7, %v1714_v27, %v2511_v18  ;;  %v2817_v10 = vpack.i.bf16 %v1997_v6, %v1996_v26  ;;  %v2044_v18 = vld [vmem:[%s3016_s28 + $0x30] sm:$0xff]  ;;  %v2335_v23 = vunpack.i.l.bf16 %v3454_v28 }
 0x103   : > { %v3771_v14 = vpop.permute.xlu1 %2518  ;;  %v1763_v12 = vpack.c.bf16 %v1747_v30, %v1746_v9  ;;  %v1730_v57 = vsel %vm1715_vm7, %v1697_v29, %v2505_v2  ;;  %v1731_v36 = vsel %vm1715_vm7, %v1698_v35, %v2506_v13  ;;  %v4154_v33 = vld [vmem:[#allocation15_spill] sm:$0xff]  ;;  %v2336_v2 = vunpack.i.h.bf16 %v3454_v28 }
 0x104   : > { %v3777_v19 = vpop.permute.xlu0 %2513  ;;  %v1755_v5 = vpack.c.bf16 %v1731_v36, %v1730_v57  ;;  %v2296_v56 = vunpack.i.h.bf16 %v4154_v33  ;;  %v2295_v13 = vunpack.i.l.bf16 %v4154_v33  ;;  %v2376_v9 = vunpack.i.h.bf16 %v3526_v52  ;;  %v4155_v36 = vld [vmem:[#allocation5_spill] sm:$0xff] }
 0x105   : > { %2808 = vrot.lane.b32.xlu1 %v3606_v21, %s2940_s9  ;;  %2165 = vmatprep.subr.msk.bf16.mxu0 %vm1771_vm8, %v1763_v12  ;;  %v2045_v21 = vld [vmem:[%s3016_s28 + $0x38] sm:$0xff]  ;;  %v2827_v29 = vpack.i.bf16 %v2029_v62, %v2028_v61  ;;  %v2822_v35 = vpack.i.bf16 %v2013_v58, %v2012_v49  ;;  %v2416_v26 = vunpack.i.h.bf16 %v3592_v3  ;;  %v2415_v6 = vunpack.i.l.bf16 %v3592_v3  ;;  %v4157_v61 = vld [vmem:[#allocation7_spill] sm:$0xff] }
 0x106   : > { %2803 = vrot.lane.b32.xlu0 %v3618_v46, %s2940_s9  ;;  %v1797_v40 = vsel %vm1771_vm8, %v1755_v5, 0  ;;  %v2375_v46 = vunpack.i.l.bf16 %v3526_v52  ;;  %v2837_v12 = vpack.i.bf16 %v2061_v7, %v3787_v16  ;;  %v2832_v57 = vpack.i.bf16 %v2045_v21, %v2044_v18  ;;  %v4158_v62 = vld [vmem:[#allocation8_spill] sm:$0xff] }
 0x107   : > { %2148 = vmatpush3.bf16.xpose.msra.mxu0 %v1797_v40  ;;  %v2529_v27 = vpop.permute.xlu1 %2528  ;;  %v1497_v28 = vsel %vm1484_vm0, %v4155_v36, %v2255_v34  ;;  %v2461_v52 = vunpack.i.h.bf16 %v3661_v47  ;;  %v2455_v5 = vunpack.i.l.bf16 %v3665_v11  ;;  %v1513_v3 = vsel %vm1484_vm0, %v4157_v61, %v2295_v13 }
 0x108   : > { %v2524_v30 = vpop.permute.xlu0 %2523  ;;  %v1530_v49 = vsel %vm1517_vm1, %v1497_v28, %v2335_v23  ;;  %v1531_v58 = vsel %vm1517_vm1, %v1498_v44, %v2336_v2  ;;  %v1546_v39 = vsel %vm1517_vm1, %v1513_v3, %v2375_v46  ;;  %v2521_v47 = vunpack.i.h.bf16 %v3771_v14 }
 0x109   : > { %2818 = vrot.lane.b32.xlu1 %v2817_v10, %s2936_s5  ;;  %v1514_v10 = vsel %vm1484_vm0, %v4158_v62, %v2296_v56  ;;  %v2520_v11 = vunpack.i.l.bf16 %v3771_v14  ;;  %v1563_v40 = vsel %vm1550_vm2, %v1530_v49, %v2415_v6  ;;  %v2516_v7 = vunpack.i.h.bf16 %v3777_v19 }
 0x10a   : > { %2813 = vrot.lane.b32.xlu0 %v2812_v20, %s2936_s5  ;;  %v1547_v15 = vsel %vm1517_vm1, %v1514_v10, %v2376_v9  ;;  %v1564_v20 = vsel %vm1550_vm2, %v1531_v58, %v2416_v26  ;;  %v2515_v18 = vunpack.i.l.bf16 %v3777_v19  ;;  %v1579_v33 = vsel %vm1550_vm2, %v1546_v39, %v2455_v5  ;;  %s2871_s5 = scalar_lea.vmem %s1884_s27, 256 }
 0x10b   : > { %v2539_v16 = vpop.permute.xlu1 %2538  ;;  %v1580_v21 = vsel %vm1550_vm2, %v1547_v15, %v2461_v52  ;;  %v2531_v56 = vunpack.i.h.bf16 %v2529_v27  ;;  %v2530_v13 = vunpack.i.l.bf16 %v2529_v27  ;;  %v2526_v14 = vunpack.i.h.bf16 %v2524_v30  ;;  %p2872_p11 = scmp.ne.s32.totalorder %s1884_s27, %s2871_s5 }
 0x10c   : > { %v2534_v34 = vpop.permute.xlu0 %2533  ;;  %v2525_v2 = vunpack.i.l.bf16 %v2524_v30  ;;  %v2541_v23 = vunpack.i.h.bf16 %v2539_v16  ;;  %v2540_v9 = vunpack.i.l.bf16 %v2539_v16  ;;  %v1612_v26 = vsel %vm1583_vm3, %v1579_v33, %v2520_v11 }
 0x10d   : > { %2828 = vrot.lane.b32.xlu1 %v2827_v29, %s2937_s6  ;;  %v1613_v6 = vsel %vm1583_vm3, %v1580_v21, %v2521_v47  ;;  %v2536_v19 = vunpack.i.h.bf16 %v2534_v34  ;;  %v2535_v36 = vunpack.i.l.bf16 %v2534_v34  ;;  %v1596_v28 = vsel %vm1583_vm3, %v1563_v40, %v2515_v18  ;;  %p2873_p12 = pnand %p2872_p11, %p3001_p5 }
 0x10e   : > { %2823 = vrot.lane.b32.xlu0 %v2822_v35, %s2937_s6  ;;  %v1597_v60 = vsel %vm1583_vm3, %v1564_v20, %v2516_v7  ;;  %v1645_v30 = vsel %vm1616_vm4, %v1612_v26, %v2530_v13  ;;  %v1646_v35 = vsel %vm1616_vm4, %v1613_v6, %v2531_v56  ;;  %v1629_v61 = vsel %vm1616_vm4, %v1596_v28, %v2525_v2  ;;  %v4160_v26 = vld [vmem:[#allocation13_spill] sm:$0xff]  ;;  %s2875_s6 = sshll.u32 %s2942_s16, 4  ;;  %s2876_s6 = int_to_ptr.vmem [resolvable:$false] %s2875_s6 }
 0x10f   : > { %v2549_v46 = vpop.permute.xlu1 %2548  ;;  %v1630_v3 = vsel %vm1616_vm4, %v1597_v60, %v2526_v14  ;;  %v1678_v62 = vsel %vm1649_vm5, %v1645_v30, %v2540_v9  ;;  %v1679_v10 = vsel %vm1649_vm5, %v1646_v35, %v2541_v23  ;;  %v1662_v58 = vsel %vm1649_vm5, %v1629_v61, %v2535_v36  ;;  %p2874_p13 = pneg %p2873_p12  ;;  %p2878_p0 = scmp.lt.s32.totalorder %s1884_s27, %s2876_s6 }
 0x110   : > { %v2544_v29 = vpop.permute.xlu0 %2543  ;;  %v2551_v44 = vunpack.i.h.bf16 %v2549_v46  ;;  %v2550_v27 = vunpack.i.l.bf16 %v2549_v46  ;;  %v1663_v16 = vsel %vm1649_vm5, %v1630_v3, %v2536_v19  ;;  %v2291_v6 = vunpack.i.h.bf16 %v4160_v26 }
 0x111   : > { %2838 = vrot.lane.b32.xlu1 %v2837_v12, %s2938_s7  ;;  %v2546_v52 = vunpack.i.h.bf16 %v2544_v29  ;;  %v2545_v5 = vunpack.i.l.bf16 %v2544_v29  ;;  %v3847_v12 = vld [vmem:[%s4121_s1] sm:$0xf]  ;;  %v2290_v19 = vunpack.i.l.bf16 %v4160_v26  ;;  %v2331_v36 = vunpack.i.h.bf16 %v3440_v50 }
 0x112   : > { %2833 = vrot.lane.b32.xlu0 %v2832_v57, %s2938_s7  ;;  %2163 = vmatprep.mubr.msk.bf16.mxu0 %vm1771_vm8, %v3847_v12  ;;  %v1711_v47 = vsel %vm1682_vm6, %v1678_v62, %v2550_v27  ;;  %v1712_v11 = vsel %vm1682_vm6, %v1679_v10, %v2551_v44  ;;  %v2941_v28 = vmov 0   ;;  %v2371_v60 = vunpack.i.h.bf16 %v3512_v17  ;;  %v2865_v10 = vld [vmem:[%s3016_s28 + $0x138] sm:$0xff]  ;;  %s2877_s7 = scalar_lea.vmem %s2876_s6, 512 }
 0x113   : > { %v2559_v49 = vpop.permute.xlu1 %2558  ;;  %v1695_v20 = vsel %vm1682_vm6, %v1662_v58, %v2545_v5  ;;  %v1696_v7 = vsel %vm1682_vm6, %v1663_v16, %v2546_v52  ;;  %2862 = vset.pattern.permute.xlu0 %v2941_v28  ;;  %v2370_v44 = vunpack.i.l.bf16 %v3512_v17  ;;  %v2411_v30 = vunpack.i.h.bf16 %v3578_v63  ;;  %v2864_v5 = vld [vmem:[%s3016_s28 + $0x80] sm:$0xff]  ;;  %p2879_p1 = scmp.lt.s32.totalorder %s2877_s7, %s2871_s5 }
 0x114   : > { %v2561_v39 = vunpack.i.h.bf16 %v2559_v49  ;;  %v2560_v57 = vunpack.i.l.bf16 %v2559_v49  ;;  %v2554_v15 = vpop.permute.xlu0 %2553  ;;  %v2410_v35 = vunpack.i.l.bf16 %v3578_v63  ;;  %v2451_v3 = vunpack.i.h.bf16 %v3652_v22  ;;  %v2866_v17 = vld [vmem:[%s3016_s28 + $0x140] sm:$0xff] }
 0x115   : > { %v2556_v34 = vunpack.i.h.bf16 %v2554_v15  ;;  %v2555_v40 = vunpack.i.l.bf16 %v2554_v15  ;;  %2848 = vrot.lane.b32.xlu1 %v3681_v45, %s2939_s8  ;;  %v4159_v45 = vld [vmem:[#allocation10_spill] sm:$0xff]  ;;  %v2450_v62 = vunpack.i.l.bf16 %v3652_v22  ;;  %v1511_v49 = vsel %vm1484_vm0, %v2865_v10, %v2290_v19  ;;  %p2880_p2 = por %p2879_p1, %p2878_p0 }
 0x116   : > { %v1744_v18 = vsel %vm1715_vm7, %v1711_v47, %v2560_v57  ;;  %v1745_v21 = vsel %vm1715_vm7, %v1712_v11, %v2561_v39  ;;  %2843 = vrot.lane.b32.xlu0 %v3691_v48, %s2939_s8  ;;  %v2251_v9 = vunpack.i.h.bf16 %v4159_v45  ;;  %v2250_v46 = vunpack.i.l.bf16 %v4159_v45 }
 0x117   : > { %v1762_v33 = vpack.c.bf16 %v1745_v21, %v1744_v18  ;;  %v2569_v56 = vpop.permute.xlu1 %2568  ;;  %v1728_v13 = vsel %vm1715_vm7, %v1695_v20, %v2555_v40  ;;  %v1729_v14 = vsel %vm1715_vm7, %v1696_v7, %v2556_v34  ;;  %v1512_v58 = vsel %vm1484_vm0, %v2866_v17, %v2291_v6  ;;  %p2881_p3 = pnand %p2880_p2, %p2874_p13 }
 0x118   : > { %v2564_v2 = vpop.permute.xlu0 %2563  ;;  %v1754_v23 = vpack.c.bf16 %v1729_v14, %v1728_v13  ;;  %v1496_v61 = vsel %vm1484_vm0, %v2864_v5, %v2251_v9  ;;  %v1544_v57 = vsel %vm1517_vm1, %v1511_v49, %v2370_v44  ;;  %v1545_v15 = vsel %vm1517_vm1, %v1512_v58, %v2371_v60 }
 0x119   : > { %2858 = vrot.lane.b32.xlu1 %v3706_v0, %s2940_s9  ;;  %2166 = vmatprep.subr.msk.bf16.mxu0 %vm1771_vm8, %v1762_v33  ;;  %v2330_v0 = vunpack.i.l.bf16 %v3440_v50  ;;  %v2863_v50 = vld [vmem:[%s3016_s28 + $0x78] sm:$0xff]  ;;  %v1529_v63 = vsel %vm1517_vm1, %v1496_v61, %v2331_v36  ;;  %v2571_v47 = vunpack.i.h.bf16 %v2569_v56  ;;  %v2570_v11 = vunpack.i.l.bf16 %v2569_v56 }
 0x11a   : > { %2853 = vrot.lane.b32.xlu0 %v3708_v59, %s2940_s9  ;;  %v1794_v48 = vsel %vm1771_vm8, %v1754_v23, 0  ;;  %v1765_v59 = vld [vmem:[%s4122_s2] sm:$0xff]  ;;  %v1495_v52 = vsel %vm1484_vm0, %v2863_v50, %v2250_v46  ;;  %v1562_v40 = vsel %vm1550_vm2, %v1529_v63, %v2411_v30  ;;  %v2566_v20 = vunpack.i.h.bf16 %v2564_v2 }
 0x11b   : > { %2150 = vmatpush3.bf16.xpose.msra.mxu0 %v1794_v48  ;;  %v2579_v29 = vpop.permute.xlu1 %2578  ;;  %v1528_v16 = vsel %vm1517_vm1, %v1495_v52, %v2330_v0  ;;  %v2565_v7 = vunpack.i.l.bf16 %v2564_v2  ;;  %v1577_v18 = vsel %vm1550_vm2, %v1544_v57, %v2450_v62  ;;  %v1578_v21 = vsel %vm1550_vm2, %v1545_v15, %v2451_v3 }
 0x11c   : > { %v2574_v27 = vpop.permute.xlu0 %2573  ;;  %v1561_v22 = vsel %vm1550_vm2, %v1528_v16, %v2410_v35  ;;  %v2581_v33 = vunpack.i.h.bf16 %v2579_v29  ;;  %v2580_v13 = vunpack.i.l.bf16 %v2579_v29  ;;  %v1610_v56 = vsel %vm1583_vm3, %v1577_v18, %v2570_v11 }
 0x11d   : > { %v2576_v14 = vunpack.i.h.bf16 %v2574_v27  ;;  %v2575_v23 = vunpack.i.l.bf16 %v2574_v27  ;;  %v1611_v48 = vsel %vm1583_vm3, %v1578_v21, %v2571_v47  ;;  %v1594_v2 = vsel %vm1583_vm3, %v1561_v22, %v2565_v7  ;;  %v4161_v7 = vld [vmem:[#allocation11_spill] sm:$0xff] }
 0x11e   : > { %1768 = vperm.xlu0 %2862, %v1765_v59   ;;  %v1595_v36 = vsel %vm1583_vm3, %v1562_v40, %v2566_v20  ;;  %v1643_v29 = vsel %vm1616_vm4, %v1610_v56, %v2580_v13  ;;  %v1644_v59 = vsel %vm1616_vm4, %v1611_v48, %v2581_v33  ;;  %v2246_v18 = vunpack.i.h.bf16 %v4161_v7  ;;  %v4162_v13 = vld [vmem:[#allocation14_spill] sm:$0xff] }
 0x11f   : > { %v2589_v39 = vpop.permute.xlu1 %2588  ;;  %v1627_v27 = vsel %vm1616_vm4, %v1594_v2, %v2575_v23  ;;  %v1628_v30 = vsel %vm1616_vm4, %v1595_v36, %v2576_v14  ;;  %v2245_v21 = vunpack.i.l.bf16 %v4161_v7  ;;  %v2286_v14 = vunpack.i.h.bf16 %v4162_v13  ;;  %v2867_v2 = vld [vmem:[%s3016_s28 + $0x60] sm:$0xff] }
 0x120   : > { %v2584_v34 = vpop.permute.xlu0 %2583  ;;  %v2591_v45 = vunpack.i.h.bf16 %v2589_v39  ;;  %v2590_v9 = vunpack.i.l.bf16 %v2589_v39  ;;  %v2285_v23 = vunpack.i.l.bf16 %v4162_v13  ;;  %v2366_v56 = vunpack.i.h.bf16 %v3516_v4 }
 0x121   : > { %v2586_v26 = vunpack.i.h.bf16 %v2584_v34  ;;  %v2585_v6 = vunpack.i.l.bf16 %v2584_v34  ;;  %v2365_v48 = vunpack.i.l.bf16 %v3516_v4  ;;  %v1493_v36 = vsel %vm1484_vm0, %v2867_v2, %v2245_v21 }
 0x122   : > { %v1676_v35 = vsel %vm1649_vm5, %v1643_v29, %v2590_v9  ;;  %v1677_v50 = vsel %vm1649_vm5, %v1644_v59, %v2591_v45  ;;  %v2326_v45 = vunpack.i.h.bf16 %v3442_v37  ;;  %v2325_v9 = vunpack.i.l.bf16 %v3442_v37  ;;  %v2869_v59 = vld [vmem:[%s3016_s28 + $0x120] sm:$0xff] }
 0x123   : > { %v2599_v46 = vpop.permute.xlu1 %2598  ;;  %v1660_v5 = vsel %vm1649_vm5, %v1627_v27, %v2585_v6  ;;  %v1661_v61 = vsel %vm1649_vm5, %v1628_v30, %v2586_v26  ;;  %v2406_v6 = vunpack.i.h.bf16 %v3582_v54  ;;  %v2446_v37 = vunpack.i.h.bf16 %v3654_v38 }
 0x124   : > { %v2594_v19 = vpop.permute.xlu0 %2593  ;;  %v2601_v0 = vunpack.i.h.bf16 %v2599_v46  ;;  %v2600_v28 = vunpack.i.l.bf16 %v2599_v46  ;;  %v2445_v29 = vunpack.i.l.bf16 %v3654_v38  ;;  %v1526_v27 = vsel %vm1517_vm1, %v1493_v36, %v2325_v9 }
 0x125   : > { %v2596_v60 = vunpack.i.h.bf16 %v2594_v19  ;;  %v2595_v44 = vunpack.i.l.bf16 %v2594_v19  ;;  %v2405_v19 = vunpack.i.l.bf16 %v3582_v54 }
 0x126   : > { %v1709_v49 = vsel %vm1682_vm6, %v1676_v35, %v2600_v28  ;;  %v1710_v17 = vsel %vm1682_vm6, %v1677_v50, %v2601_v0  ;;  %v2868_v0 = vld [vmem:[%s3016_s28 + $0x68] sm:$0xff] }
 0x127   : > { %v2609_v52 = vpop.permute.xlu1 %2608  ;;  %v1693_v63 = vsel %vm1682_vm6, %v1660_v5, %v2595_v44  ;;  %v1694_v39 = vsel %vm1682_vm6, %v1661_v61, %v2596_v60  ;;  %v1494_v28 = vsel %vm1484_vm0, %v2868_v0, %v2246_v18  ;;  %v1509_v60 = vsel %vm1484_vm0, %v2869_v59, %v2285_v23  ;;  %v2870_v44 = vld [vmem:[%s3016_s28 + $0x128] sm:$0xff] }
 0x128   : > { %v2611_v3 = vunpack.i.h.bf16 %v2609_v52  ;;  %v2610_v62 = vunpack.i.l.bf16 %v2609_v52  ;;  %v2604_v10 = vpop.permute.xlu0 %2603  ;;  %v1510_v4 = vsel %vm1484_vm0, %v2870_v44, %v2286_v14  ;;  %v1527_v54 = vsel %vm1517_vm1, %v1494_v28, %v2326_v45 }
 0x129   : > { %v2606_v58 = vunpack.i.h.bf16 %v2604_v10  ;;  %v2605_v16 = vunpack.i.l.bf16 %v2604_v10  ;;  %v1542_v35 = vsel %vm1517_vm1, %v1509_v60, %v2365_v48  ;;  %v1543_v50 = vsel %vm1517_vm1, %v1510_v4, %v2366_v56 }
 0x12a   : > { %v1742_v57 = vsel %vm1715_vm7, %v1709_v49, %v2610_v62  ;;  %v1743_v15 = vsel %vm1715_vm7, %v1710_v17, %v2611_v3  ;;  %v1559_v38 = vsel %vm1550_vm2, %v1526_v27, %v2405_v19  ;;  %v1560_v3 = vsel %vm1550_vm2, %v1527_v54, %v2406_v6 }
 0x12b   : > { %v1761_v47 = vpack.c.bf16 %v1743_v15, %v1742_v57  ;;  %v2619_v11 = vpop.permute.xlu1 %2618  ;;  %v1726_v34 = vsel %vm1715_vm7, %v1693_v63, %v2605_v16  ;;  %v1727_v22 = vsel %vm1715_vm7, %v1694_v39, %v2606_v58  ;;  %v1575_v49 = vsel %vm1550_vm2, %v1542_v35, %v2445_v29 }
 0x12c   : > { %v2614_v40 = vpop.permute.xlu0 %2613  ;;  %v1753_v20 = vpack.c.bf16 %v1727_v22, %v1726_v34  ;;  %v2621_v52 = vunpack.i.h.bf16 %v2619_v11  ;;  %v2620_v5 = vunpack.i.l.bf16 %v2619_v11  ;;  %v1576_v17 = vsel %vm1550_vm2, %v1543_v50, %v2446_v37 }
 0x12d   : > { %2167 = vmatprep.subr.msk.bf16.mxu0 %vm1771_vm8, %v1761_v47  ;;  %v2616_v62 = vunpack.i.h.bf16 %v2614_v40  ;;  %v2615_v10 = vunpack.i.l.bf16 %v2614_v40 }
 0x12e   : > { %v1791_v33 = vsel %vm1771_vm8, %v1753_v20, 0  ;;  %v1608_v11 = vsel %vm1583_vm3, %v1575_v49, %v2620_v5  ;;  %v1609_v34 = vsel %vm1583_vm3, %v1576_v17, %v2621_v52 }
 0x12f   : > { %2152 = vmatpush3.bf16.xpose.msra.mxu0 %v1791_v33  ;;  %v2629_v46 = vpop.permute.xlu1 %2628  ;;  %v1592_v40 = vsel %vm1583_vm3, %v1559_v38, %v2615_v10  ;;  %v1593_v18 = vsel %vm1583_vm3, %v1560_v3, %v2616_v62 }
 0x130   : > { %v2624_v26 = vpop.permute.xlu0 %2623  ;;  %v2631_v58 = vunpack.i.h.bf16 %v2629_v46  ;;  %v2630_v16 = vunpack.i.l.bf16 %v2629_v46 }
 0x131   : > { %v2626_v63 = vunpack.i.h.bf16 %v2624_v26  ;;  %v2625_v39 = vunpack.i.l.bf16 %v2624_v26 }
 0x132   : > { %v1641_v13 = vsel %vm1616_vm4, %v1608_v11, %v2630_v16  ;;  %v1642_v14 = vsel %vm1616_vm4, %v1609_v34, %v2631_v58 }
 0x133   : > { %v2639_v30 = vpop.permute.xlu1 %2638  ;;  %v1625_v9 = vsel %vm1616_vm4, %v1592_v40, %v2625_v39  ;;  %v1626_v46 = vsel %vm1616_vm4, %v1593_v18, %v2626_v63 }
 0x134   : > { %v2634_v61 = vpop.permute.xlu0 %2633  ;;  %v2641_v57 = vunpack.i.h.bf16 %v2639_v30  ;;  %v2640_v15 = vunpack.i.l.bf16 %v2639_v30 }
 0x135   : > { %v2636_v22 = vunpack.i.h.bf16 %v2634_v61  ;;  %v2635_v20 = vunpack.i.l.bf16 %v2634_v61 }
 0x136   : > { %v1674_v56 = vsel %vm1649_vm5, %v1641_v13, %v2640_v15  ;;  %v1675_v48 = vsel %vm1649_vm5, %v1642_v14, %v2641_v57 }
 0x137   : > { %v2649_v47 = vpop.permute.xlu1 %2648  ;;  %v1658_v6 = vsel %vm1649_vm5, %v1625_v9, %v2635_v20  ;;  %v1659_v19 = vsel %vm1649_vm5, %v1626_v46, %v2636_v22 }
 0x138   : > { %v2644_v7 = vpop.permute.xlu0 %2643  ;;  %v2651_v21 = vunpack.i.h.bf16 %v2649_v47  ;;  %v2650_v33 = vunpack.i.l.bf16 %v2649_v47 }
 0x139   : > { %v2646_v23 = vunpack.i.h.bf16 %v2644_v7  ;;  %v2645_v45 = vunpack.i.l.bf16 %v2644_v7 }
 0x13a   : > { %v1707_v28 = vsel %vm1682_vm6, %v1674_v56, %v2650_v33  ;;  %v1708_v37 = vsel %vm1682_vm6, %v1675_v48, %v2651_v21 }
 0x13b   : > { %v2659_v26 = vpop.permute.xlu1 %2658  ;;  %v1691_v60 = vsel %vm1682_vm6, %v1658_v6, %v2645_v45  ;;  %v1692_v44 = vsel %vm1682_vm6, %v1659_v19, %v2646_v23 }
 0x13c   : > { %v2661_v2 = vunpack.i.h.bf16 %v2659_v26  ;;  %v2660_v36 = vunpack.i.l.bf16 %v2659_v26  ;;  %v2654_v0 = vpop.permute.xlu0 %2653 }
 0x13d   : > { %v2656_v29 = vunpack.i.h.bf16 %v2654_v0  ;;  %v2655_v59 = vunpack.i.l.bf16 %v2654_v0 }
 0x13e   : > { %v1740_v4 = vsel %vm1715_vm7, %v1707_v28, %v2660_v36  ;;  %v1741_v27 = vsel %vm1715_vm7, %v1708_v37, %v2661_v2 }
 0x13f   : > { %v1760_v54 = vpack.c.bf16 %v1741_v27, %v1740_v4  ;;  %v2669_v30 = vpop.permute.xlu1 %2668  ;;  %v1724_v35 = vsel %vm1715_vm7, %v1691_v60, %v2655_v59  ;;  %v1725_v50 = vsel %vm1715_vm7, %v1692_v44, %v2656_v29 }
 0x140   : > { %v2664_v52 = vpop.permute.xlu0 %2663  ;;  %v1752_v5 = vpack.c.bf16 %v1725_v50, %v1724_v35  ;;  %v2671_v10 = vunpack.i.h.bf16 %v2669_v30  ;;  %v2670_v49 = vunpack.i.l.bf16 %v2669_v30 }
 0x141   : > { %2168 = vmatprep.subr.msk.bf16.mxu0 %vm1771_vm8, %v1760_v54  ;;  %v2666_v58 = vunpack.i.h.bf16 %v2664_v52  ;;  %v2665_v16 = vunpack.i.l.bf16 %v2664_v52 }
 0x142   : > { %v1788_v61 = vsel %vm1771_vm8, %v1752_v5, 0  ;;  %v1606_v22 = vsel %vm1583_vm3, %v3634_v25, %v2670_v49  ;;  %v1607_v20 = vsel %vm1583_vm3, %v3638_v53, %v2671_v10 }
 0x143   : > { %2154 = vmatpush3.bf16.xpose.msra.mxu0 %v1788_v61  ;;  %v2679_v38 = vpop.permute.xlu1 %2678  ;;  %v1590_v21 = vsel %vm1583_vm3, %v3560_v8, %v2665_v16  ;;  %v1591_v33 = vsel %vm1583_vm3, %v3564_v42, %v2666_v58 }
 0x144   : > { %v2674_v3 = vpop.permute.xlu0 %2673  ;;  %v2681_v63 = vunpack.i.h.bf16 %v2679_v38  ;;  %v2680_v39 = vunpack.i.l.bf16 %v2679_v38 }
 0x145   : > { %v2676_v57 = vunpack.i.h.bf16 %v2674_v3  ;;  %v2675_v15 = vunpack.i.l.bf16 %v2674_v3 }
 0x146   : > { %v1639_v23 = vsel %vm1616_vm4, %v1606_v22, %v2680_v39  ;;  %v1640_v45 = vsel %vm1616_vm4, %v1607_v20, %v2681_v63 }
 0x147   : > { %v2689_v62 = vpop.permute.xlu1 %2688  ;;  %v1623_v46 = vsel %vm1616_vm4, %v1590_v21, %v2675_v15  ;;  %v1624_v53 = vsel %vm1616_vm4, %v1591_v33, %v2676_v57 }
 0x148   : > { %v2684_v17 = vpop.permute.xlu0 %2683  ;;  %v2691_v47 = vunpack.i.h.bf16 %v2689_v62  ;;  %v2690_v11 = vunpack.i.l.bf16 %v2689_v62 }
 0x149   : > { %v2686_v7 = vunpack.i.h.bf16 %v2684_v17  ;;  %v2685_v40 = vunpack.i.l.bf16 %v2684_v17 }
 0x14a   : > { %v1672_v56 = vsel %vm1649_vm5, %v1639_v23, %v2690_v11  ;;  %v1673_v48 = vsel %vm1649_vm5, %v1640_v45, %v2691_v47 }
 0x14b   : > { %v2699_v34 = vpop.permute.xlu1 %2698  ;;  %v1656_v26 = vsel %vm1649_vm5, %v1623_v46, %v2685_v40  ;;  %v1657_v42 = vsel %vm1649_vm5, %v1624_v53, %v2686_v7 }
 0x14c   : > { %v2694_v18 = vpop.permute.xlu0 %2693  ;;  %v2701_v13 = vunpack.i.h.bf16 %v2699_v34  ;;  %v2700_v14 = vunpack.i.l.bf16 %v2699_v34 }
 0x14d   : > { %v2696_v9 = vunpack.i.h.bf16 %v2694_v18  ;;  %v2695_v25 = vunpack.i.l.bf16 %v2694_v18 }
 0x14e   : > { %v1705_v36 = vsel %vm1682_vm6, %v1672_v56, %v2700_v14  ;;  %v1706_v0 = vsel %vm1682_vm6, %v1673_v48, %v2701_v13 }
 0x14f   : > { %v2709_v8 = vpop.permute.xlu1 %2708  ;;  %v1689_v29 = vsel %vm1682_vm6, %v1656_v26, %v2695_v25  ;;  %v1690_v59 = vsel %vm1682_vm6, %v1657_v42, %v2696_v9 }
 0x150   : > { %v2711_v6 = vunpack.i.h.bf16 %v2709_v8  ;;  %v2710_v19 = vunpack.i.l.bf16 %v2709_v8  ;;  %v2704_v2 = vpop.permute.xlu0 %2703 }
 0x151   : > { %v2706_v28 = vunpack.i.h.bf16 %v2704_v2  ;;  %v2705_v37 = vunpack.i.l.bf16 %v2704_v2 }
 0x152   : > { %v1738_v60 = vsel %vm1715_vm7, %v1705_v36, %v2710_v19  ;;  %v1739_v44 = vsel %vm1715_vm7, %v1706_v0, %v2711_v6 }
 0x153   : > { %v1759_v4 = vpack.c.bf16 %v1739_v44, %v1738_v60  ;;  %v2719_v27 = vpop.permute.xlu1 %2718  ;;  %v1722_v54 = vsel %vm1715_vm7, %v1689_v29, %v2705_v37  ;;  %v1723_v30 = vsel %vm1715_vm7, %v1690_v59, %v2706_v28 }
 0x154   : > { %v2714_v35 = vpop.permute.xlu0 %2713  ;;  %v1751_v50 = vpack.c.bf16 %v1723_v30, %v1722_v54  ;;  %v2721_v3 = vunpack.i.h.bf16 %v2719_v27  ;;  %v2720_v62 = vunpack.i.l.bf16 %v2719_v27 }
 0x155   : > { %2169 = vmatprep.subr.msk.bf16.mxu0 %vm1771_vm8, %v1759_v4  ;;  %v2716_v49 = vunpack.i.h.bf16 %v2714_v35  ;;  %v2715_v17 = vunpack.i.l.bf16 %v2714_v35 }
 0x156   : > { %v1785_v52 = vsel %vm1771_vm8, %v1751_v50, 0  ;;  %v1604_v11 = vsel %vm1583_vm3, %v3646_v51, %v2720_v62  ;;  %v1605_v34 = vsel %vm1583_vm3, %v3650_v32, %v2721_v3 }
 0x157   : > { %2156 = vmatpush3.bf16.xpose.msra.mxu0 %v1785_v52  ;;  %v2729_v5 = vpop.permute.xlu1 %2728  ;;  %v1588_v40 = vsel %vm1583_vm3, %v3572_v31, %v2715_v17  ;;  %v1589_v18 = vsel %vm1583_vm3, %v3576_v24, %v2716_v49 }
 0x158   : > { %v2724_v61 = vpop.permute.xlu0 %2723  ;;  %v2731_v58 = vunpack.i.h.bf16 %v2729_v5  ;;  %v2730_v16 = vunpack.i.l.bf16 %v2729_v5 }
 0x159   : > { %v2726_v63 = vunpack.i.h.bf16 %v2724_v61  ;;  %v2725_v39 = vunpack.i.l.bf16 %v2724_v61 }
 0x15a   : > { %v1637_v13 = vsel %vm1616_vm4, %v1604_v11, %v2730_v16  ;;  %v1638_v14 = vsel %vm1616_vm4, %v1605_v34, %v2731_v58 }
 0x15b   : > { %v2739_v38 = vpop.permute.xlu1 %2738  ;;  %v1621_v45 = vsel %vm1616_vm4, %v1588_v40, %v2725_v39  ;;  %v1622_v32 = vsel %vm1616_vm4, %v1589_v18, %v2726_v63 }
 0x15c   : > { %v2734_v10 = vpop.permute.xlu0 %2733  ;;  %v2741_v57 = vunpack.i.h.bf16 %v2739_v38  ;;  %v2740_v15 = vunpack.i.l.bf16 %v2739_v38 }
 0x15d   : > { %v2736_v22 = vunpack.i.h.bf16 %v2734_v10  ;;  %v2735_v20 = vunpack.i.l.bf16 %v2734_v10 }
 0x15e   : > { %v1670_v9 = vsel %vm1649_vm5, %v1637_v13, %v2740_v15  ;;  %v1671_v25 = vsel %vm1649_vm5, %v1638_v14, %v2741_v57 }
 0x15f   : > { %v2749_v47 = vpop.permute.xlu1 %2748  ;;  %v1654_v46 = vsel %vm1649_vm5, %v1621_v45, %v2735_v20  ;;  %v1655_v24 = vsel %vm1649_vm5, %v1622_v32, %v2736_v22 }
 0x160   : > { %v2744_v7 = vpop.permute.xlu0 %2743  ;;  %v2751_v21 = vunpack.i.h.bf16 %v2749_v47  ;;  %v2750_v33 = vunpack.i.l.bf16 %v2749_v47 }
 0x161   : > { %v2746_v23 = vunpack.i.h.bf16 %v2744_v7  ;;  %v2745_v51 = vunpack.i.l.bf16 %v2744_v7 }
 0x162   : > { %v1703_v8 = vsel %vm1682_vm6, %v1670_v9, %v2750_v33  ;;  %v1704_v26 = vsel %vm1682_vm6, %v1671_v25, %v2751_v21 }
 0x163   : > { %v2759_v31 = vpop.permute.xlu1 %2758  ;;  %v1687_v19 = vsel %vm1682_vm6, %v1654_v46, %v2745_v51  ;;  %v1688_v2 = vsel %vm1682_vm6, %v1655_v24, %v2746_v23 }
 0x164   : > { %v2761_v53 = vunpack.i.h.bf16 %v2759_v31  ;;  %v2760_v56 = vunpack.i.l.bf16 %v2759_v31  ;;  %v2754_v48 = vpop.permute.xlu0 %2753 }
 0x165   : > { %v2756_v42 = vunpack.i.h.bf16 %v2754_v48  ;;  %v2755_v6 = vunpack.i.l.bf16 %v2754_v48 }
 0x166   : > { %v1736_v36 = vsel %vm1715_vm7, %v1703_v8, %v2760_v56  ;;  %v1737_v0 = vsel %vm1715_vm7, %v1704_v26, %v2761_v53 }
 0x167   : > { %v1758_v28 = vpack.c.bf16 %v1737_v0, %v1736_v36  ;;  %v2769_v37 = vpop.permute.xlu1 %2768  ;;  %v1720_v29 = vsel %vm1715_vm7, %v1687_v19, %v2755_v6  ;;  %v1721_v59 = vsel %vm1715_vm7, %v1688_v2, %v2756_v42 }
 0x168   : > { %v2764_v60 = vpop.permute.xlu0 %2763  ;;  %v1750_v44 = vpack.c.bf16 %v1721_v59, %v1720_v29  ;;  %v2771_v35 = vunpack.i.h.bf16 %v2769_v37  ;;  %v2770_v50 = vunpack.i.l.bf16 %v2769_v37 }
 0x169   : > { %2170 = vmatprep.subr.msk.bf16.mxu0 %vm1771_vm8, %v1758_v28  ;;  %v2766_v5 = vunpack.i.h.bf16 %v2764_v60  ;;  %v2765_v61 = vunpack.i.l.bf16 %v2764_v60 }
 0x16a   : > { %v1782_v4 = vsel %vm1771_vm8, %v1750_v44, 0  ;;  %v1602_v16 = vsel %vm1583_vm3, %v3610_v55, %v2770_v50  ;;  %v1603_v63 = vsel %vm1583_vm3, %v3614_v1, %v2771_v35 }
 0x16b   : > { %2158 = vmatpush3.bf16.xpose.msra.mxu0 %v1782_v4  ;;  %v2779_v27 = vpop.permute.xlu1 %2778  ;;  %v1586_v47 = vsel %vm1583_vm3, %v3536_v43, %v2765_v61  ;;  %v1587_v11 = vsel %vm1583_vm3, %v3540_v41, %v2766_v5  ;;  %v4164_v61 = vld [vmem:[#allocation19_spill] sm:$0xff] }
 0x16c   : > { %v2774_v54 = vpop.permute.xlu0 %2773  ;;  %v2781_v38 = vunpack.i.h.bf16 %v2779_v27  ;;  %v2780_v3 = vunpack.i.l.bf16 %v2779_v27 }
 0x16d   : > { %v2776_v62 = vunpack.i.h.bf16 %v2774_v54  ;;  %v2775_v10 = vunpack.i.l.bf16 %v2774_v54 }
 0x16e   : > { %v1635_v20 = vsel %vm1616_vm4, %v1602_v16, %v2780_v3  ;;  %v1636_v7 = vsel %vm1616_vm4, %v1603_v63, %v2781_v38 }
 0x16f   : > { %v2789_v30 = vpop.permute.xlu1 %2788  ;;  %v1619_v18 = vsel %vm1616_vm4, %v1586_v47, %v2775_v10  ;;  %v1620_v1 = vsel %vm1616_vm4, %v1587_v11, %v2776_v62 }
 0x170   : > { %v2784_v52 = vpop.permute.xlu0 %2783  ;;  %v2791_v49 = vunpack.i.h.bf16 %v2789_v30  ;;  %v2790_v17 = vunpack.i.l.bf16 %v2789_v30 }
 0x171   : > { %v2786_v39 = vunpack.i.h.bf16 %v2784_v52  ;;  %v2785_v57 = vunpack.i.l.bf16 %v2784_v52  ;;  %v4163_v52 = vld [vmem:[#allocation18_spill] sm:$0xff] }
 0x172   : > { %v1668_v21 = vsel %vm1649_vm5, %v1635_v20, %v2790_v17  ;;  %v1669_v33 = vsel %vm1649_vm5, %v1636_v7, %v2791_v49  ;;  %v4165_v49 = vld [vmem:[#allocation16_spill] sm:$0xff] }
 0x173   : > { %v2799_v58 = vpop.permute.xlu1 %2798  ;;  %v1652_v13 = vsel %vm1649_vm5, %v1619_v18, %v2785_v57  ;;  %v1653_v41 = vsel %vm1649_vm5, %v1620_v1, %v2786_v39 }
 0x174   : > { %v2794_v15 = vpop.permute.xlu0 %2793  ;;  %v2801_v34 = vunpack.i.h.bf16 %v2799_v58  ;;  %v2800_v22 = vunpack.i.l.bf16 %v2799_v58  ;;  %v4166_v58 = vld [vmem:[#allocation17_spill] sm:$0xff] }
 0x175   : > { %v2796_v40 = vunpack.i.h.bf16 %v2794_v15  ;;  %v2795_v55 = vunpack.i.l.bf16 %v2794_v15 }
 0x176   : > { %v1701_v45 = vsel %vm1682_vm6, %v1668_v21, %v2800_v22  ;;  %v1702_v32 = vsel %vm1682_vm6, %v1669_v33, %v2801_v34 }
 0x177   : > { %v2809_v43 = vpop.permute.xlu1 %2808  ;;  %v1685_v31 = vsel %vm1682_vm6, %v1652_v13, %v2795_v55  ;;  %v1686_v46 = vsel %vm1682_vm6, %v1653_v41, %v2796_v40 }
 0x178   : > { %v2811_v14 = vunpack.i.h.bf16 %v2809_v43  ;;  %v2810_v23 = vunpack.i.l.bf16 %v2809_v43  ;;  %v2804_v51 = vpop.permute.xlu0 %2803 }
 0x179   : > { %v2806_v9 = vunpack.i.h.bf16 %v2804_v51  ;;  %v2805_v25 = vunpack.i.l.bf16 %v2804_v51 }
 0x17a   : > { %v1734_v24 = vsel %vm1715_vm7, %v1701_v45, %v2810_v23  ;;  %v1735_v53 = vsel %vm1715_vm7, %v1702_v32, %v2811_v14 }
 0x17b   : > { %v1757_v56 = vpack.c.bf16 %v1735_v53, %v1734_v24  ;;  %v2819_v48 = vpop.permute.xlu1 %2818  ;;  %v1718_v8 = vsel %vm1715_vm7, %v1685_v31, %v2805_v25  ;;  %v1719_v26 = vsel %vm1715_vm7, %v1686_v46, %v2806_v9 }
 0x17c   : > { %v2814_v42 = vpop.permute.xlu0 %2813  ;;  %v1749_v6 = vpack.c.bf16 %v1719_v26, %v1718_v8  ;;  %v2821_v28 = vunpack.i.h.bf16 %v2819_v48  ;;  %v2820_v37 = vunpack.i.l.bf16 %v2819_v48 }
 0x17d   : > { %2171 = vmatprep.subr.msk.bf16.mxu0 %vm1771_vm8, %v1757_v56  ;;  %v2816_v59 = vunpack.i.h.bf16 %v2814_v42  ;;  %v2815_v60 = vunpack.i.l.bf16 %v2814_v42 }
 0x17e   : > { %v1779_v19 = vsel %vm1771_vm8, %v1749_v6, 0  ;;  %v1600_v5 = vsel %vm1583_vm3, %v4163_v52, %v2820_v37  ;;  %v1601_v38 = vsel %vm1583_vm3, %v4164_v61, %v2821_v28 }
 0x17f   : > { %2160 = vmatpush3.bf16.xpose.msra.mxu0 %v1779_v19  ;;  %v2829_v2 = vpop.permute.xlu1 %2828  ;;  %v1584_v17 = vsel %vm1583_vm3, %v4165_v49, %v2815_v60  ;;  %v1585_v16 = vsel %vm1583_vm3, %v4166_v58, %v2816_v59 }
 0x180   : > { %v2824_v36 = vpop.permute.xlu0 %2823  ;;  %v2831_v44 = vunpack.i.h.bf16 %v2829_v2  ;;  %v2830_v4 = vunpack.i.l.bf16 %v2829_v2 }
 0x181   : > { %v2826_v27 = vunpack.i.h.bf16 %v2824_v36  ;;  %v2825_v54 = vunpack.i.l.bf16 %v2824_v36 }
 0x182   : > { %v1633_v57 = vsel %vm1616_vm4, %v1600_v5, %v2830_v4  ;;  %v1634_v15 = vsel %vm1616_vm4, %v1601_v38, %v2831_v44 }
 0x183   : > { %v2839_v0 = vpop.permute.xlu1 %2838  ;;  %v1617_v34 = vsel %vm1616_vm4, %v1584_v17, %v2825_v54  ;;  %v1618_v22 = vsel %vm1616_vm4, %v1585_v16, %v2826_v27 }
 0x184   : > { %v2834_v29 = vpop.permute.xlu0 %2833  ;;  %v2841_v30 = vunpack.i.h.bf16 %v2839_v0  ;;  %v2840_v35 = vunpack.i.l.bf16 %v2839_v0 }
 0x185   : > { %v2836_v3 = vunpack.i.h.bf16 %v2834_v29  ;;  %v2835_v62 = vunpack.i.l.bf16 %v2834_v29 }
 0x186   : > { %v1666_v20 = vsel %vm1649_vm5, %v1633_v57, %v2840_v35  ;;  %v1667_v7 = vsel %vm1649_vm5, %v1634_v15, %v2841_v30 }
 0x187   : > { %v2849_v50 = vpop.permute.xlu1 %2848  ;;  %v1650_v55 = vsel %vm1649_vm5, %v1617_v34, %v2835_v62  ;;  %v1651_v18 = vsel %vm1649_vm5, %v1618_v22, %v2836_v3 }
 0x188   : > { %v2844_v10 = vpop.permute.xlu0 %2843  ;;  %v2851_v63 = vunpack.i.h.bf16 %v2849_v50  ;;  %v2850_v39 = vunpack.i.l.bf16 %v2849_v50 }
 0x189   : > { %v2846_v47 = vunpack.i.h.bf16 %v2844_v10  ;;  %v2845_v11 = vunpack.i.l.bf16 %v2844_v10 }
 0x18a   : > { %v1699_v43 = vsel %vm1682_vm6, %v1666_v20, %v2850_v39  ;;  %v1700_v13 = vsel %vm1682_vm6, %v1667_v7, %v2851_v63 }
 0x18b   : > { %v2859_v40 = vpop.permute.xlu1 %2858  ;;  %v1683_v23 = vsel %vm1682_vm6, %v1650_v55, %v2845_v11  ;;  %v1684_v51 = vsel %vm1682_vm6, %v1651_v18, %v2846_v47 }
 0x18c   : > { %v2861_v1 = vunpack.i.h.bf16 %v2859_v40  ;;  %v2860_v21 = vunpack.i.l.bf16 %v2859_v40  ;;  %v2854_v33 = vpop.permute.xlu0 %2853 }
 0x18d   : > { %v2856_v41 = vunpack.i.h.bf16 %v2854_v33  ;;  %v2855_v14 = vunpack.i.l.bf16 %v2854_v33 }
 0x18e   : > { %v1732_v45 = vsel %vm1715_vm7, %v1699_v43, %v2860_v21  ;;  %v1733_v32 = vsel %vm1715_vm7, %v1700_v13, %v2861_v1 }
 0x18f   : > { %v1756_v9 = vpack.c.bf16 %v1733_v32, %v1732_v45  ;;  %v1716_v25 = vsel %vm1715_vm7, %v1683_v23, %v2855_v14  ;;  %v1717_v31 = vsel %vm1715_vm7, %v1684_v51, %v2856_v41 }
 0x190   : > { %v1748_v46 = vpack.c.bf16 %v1717_v31, %v1716_v25 }
 0x191   : > { %2172 = vmatprep.subr.msk.bf16.mxu0 %vm1771_vm8, %v1756_v9 }
 0x192   : > { %v1776_v24 = vsel %vm1771_vm8, %v1748_v46, 0 }
 0x193   : > { %2162 = vmatpush3.bf16.xpose.msra.mxu0 %v1776_v24 }
 0x199   : > { %v1769_v53 = vpop.permute.xlu0 %1768 }
 0x19a   : > { %2164 = vmatmul.mubr.msk.bf16.vlgmr.msra.gmra.mxu0 %vm1771_vm8, %v3847_v12 }
 0x25a   : > { %v1857_v56 = vpop.f32.mrf.mxu0 }
 0x25b   : > { %v1858_v48 = vadd.f32 %v1857_v56, %v1769_v53 }
 0x25c   : > { %v1859_v8 = vpop.f32.mrf.mxu0 }
 0x25d   : > { %v1864_v26 = vmax.f32 %v1858_v48, 0.0  ;;  %v1860_v42 = vadd.f32 %v1859_v8, %v1769_v53 }
 0x25e   : > { %v1861_v6 = vpop.f32.mrf.mxu0 }
 0x25f   : > { %1866 = vst [vmem:[%s163_s26] sm:$0xff] %v1864_v26  ;;  %v1865_v19 = vmax.f32 %v1860_v42, 0.0 }
 0x260   : > { %v1862_v12 = vpop.f32.mrf.mxu0 }
 0x261   : > { %1867 = vst [vmem:[%s163_s26 + $0x8] sm:$0xff] %v1865_v19 }
 0x262   : > { %2884 = shalt.err (!%p2881_p3)
}
 0x263   : > { %s2885_s8 = scalar_lea.hbm %s4085_s30, 256  ;;  %s2889_s11 = scalar_lea.hbm %s4123_s3, 512 }
 0x264   : > { %p2886_p4 = scmp.ne.s32.totalorder %s4085_s30, %s2885_s8  ;;  %p2890_p9 = scmp.lt.s32.totalorder %s4085_s30, %s4123_s3 }
 0x265   : > { %p2891_p10 = scmp.lt.s32.totalorder %s2889_s11, %s2885_s8 }
 0x266   : > { %p2887_p7 = pnand %p2886_p4, %p3001_p5 }
 0x267   : > { %p2892_p11 = por %p2891_p10, %p2890_p9 }
 0x268   : > { %p2888_p8 = pneg %p2887_p7 }
 0x26a   : > { %p2893_p12 = pnand %p2892_p11, %p2888_p8 }
 0x26c   : > { %2896 = shalt.err (!%p2893_p12)
}
 0x26d   : > { %2174 = dma.vmem_to_hbm [thread:$0]  (%p3001_p5), %s1884_s27, 256, %s4085_s30, %s1869_s4  }
 0x26e PF: > { %p2180_p13 = scmp.ge.s32.totalorder %s2931_s15, 2  ;;  %s1895_s20 = sand.u32 1, %s2919_s12  }
 0x26f   : > { %s1896_s24 = scalar_lea.sflag [#allocation3], %s1895_s20 }
 0x270   : > { %p2177_p0 = pnand %p2180_p13, %p3005_p6 }
 0x272   : > { %p2178_p1 = pneg %p2177_p0 }
 0x274   : > { %2914 = dma.done.wait (%p2178_p1), %s1896_s24, 256  }
 0x275   : > { %2916 = vsyncadd (%p2178_p1), %s1896_s24, 4294967040  ;;  %p13_p2 = scmp.ge.s32.totalorder %s2988_s18, 4   ;;  %s4167_s12 = smov %s2923_s13 }
 0x276   : > { %s4168_s13 = smov %s2927_s14  ;;  %s4169_s14 = smov %s2999_s21 }
 0x277   : > { %s4170_s15 = smov %s2988_s18  ;;  %15 = sbr.rel (!%p13_p2) target bundleno = 3 (0x3), region = 69 }
 0x27c   :  { %1901 = vsyncpa [#allocation3], 1 }
 0x27d   :  { %1903 = vsyncpa [#allocation3 + $0x1], 1 }

</bundles_post_ra>
